<compile_context>
chip_gen: v6e
topology: v6e:2x2x1
jax: 0.10.0
libtpu: 0.0.40
codegen_flags: <defaults>
</compile_context>

<pallas_src>
import jax
import jax.numpy as jnp
from jax.experimental import pallas as pl
from jax.experimental.pallas import tpu as pltpu


def _round_up(n, m):
    return -(-n // m) * m


def protwave_kernel(xs_ref, eps_ref, Wbig_ref, W2_ref, Wcexp_ref, b_ref,
                    poolT_ref, rsel_ref, cpat_ref, logits_ref, stats_ref):
    """One grid step processes Bt sequences; rows are flattened (seq, pos)."""
    f32 = jnp.float32
    Bt, Z = eps_ref.shape
    H = Wcexp_ref.shape[1]
    Apad = logits_ref.shape[1]          # lane-padded logits width (128)
    SW = stats_ref.shape[1]             # lane-padded stats width (128)
    CW = cpat_ref.shape[1]              # padded conditioning-pattern width
    Zc = Z + 1

    # ---- single fused conv matmul over the im2col slab ----------------------
    #   columns [0:H)  : encoder Conv1d(A->H, k=3, 'same') pre-activation
    #   columns [H:2H) : generator causal Conv1d(k=3) pre-activation (x channels)
    hh = jnp.dot(xs_ref[...], Wbig_ref[...], preferred_element_type=f32)    # (M, 2H)

    h_enc = jnp.maximum(hh[:, 0:H] + b_ref[0:1, 0:H], 0.0)                  # (M, H)

    # ---- mean pool over L (matmul with the 1/L pooling matrix) + heads ------
    hbar = jnp.dot(poolT_ref[...], h_enc, preferred_element_type=f32)       # (Bt, H)
    heads = (jnp.dot(hbar, W2_ref[:, Apad:Apad + 2 * Z],
                     preferred_element_type=f32) + b_ref[2:3, 0:2 * Z])     # (Bt, 2Z)
    mu = heads[:, 0:Z]
    raw = heads[:, Z:2 * Z]
    # numerically stable softplus (matches torch.nn.functional.softplus)
    var = jnp.maximum(raw, 0.0) + jnp.log1p(jnp.exp(-jnp.abs(raw))) + 1e-6

    # ---- reparameterization (eps ~ U[0,1), mirroring torch.rand_like) -------
    z = mu + eps_ref[...].astype(f32) * jnp.sqrt(var)                       # (Bt, Z)

    # ---- conditioning-channel contribution to the generator (matmuls only) --
    # gen_cond[b*L+t, :] = sum_j c[b, t+o_j] * Wg1[j][A, :],  o_j in {-2,-1,0}
    # with c[b, s] = z[b] . Wcm[:, s] + bcm[s], zero for s < 0 (causal pad).
    zq = jnp.concatenate([z, jnp.ones((Bt, 1), f32)], axis=1)               # (Bt, Z+1)
    parts = [zq, zq, zq]
    if CW > 3 * Zc:
        parts.append(jnp.zeros((Bt, CW - 3 * Zc), f32))
    zq3 = jnp.concatenate(parts, axis=1)                                    # (Bt, CW)
    zrep = jnp.dot(rsel_ref[...], zq3, preferred_element_type=f32)          # (M, CW)
    E = zrep * cpat_ref[...]                                                # (M, CW)
    gen_cond = jnp.dot(E, Wcexp_ref[...], preferred_element_type=f32)       # (M, H)

    h_gen = jnp.maximum(hh[:, H:2 * H] + gen_cond + b_ref[1:2, 0:H], 0.0)   # (M, H)

    # ---- 1x1 conv to lane-padded bf16 logits (unmasked 128-lane stores) -----
    logits = (jnp.dot(h_gen, W2_ref[:, 0:Apad], preferred_element_type=f32)
              + b_ref[3:4, 0:Apad])                                         # (M, Apad)
    logits_ref[...] = logits.astype(logits_ref.dtype)

    # ---- packed latent stats [z | mu | var | 0]: one lane-dense store -------
    sparts = [z, mu, var]
    if SW > 3 * Z:
        sparts.append(jnp.zeros((Bt, SW - 3 * Z), f32))
    stats_ref[...] = jnp.concatenate(sparts, axis=1).astype(stats_ref.dtype)


def _pack_params(p, L, Bt):
    """Pack the 12 small parameter tensors into 7 kernel-resident arrays."""
    f32 = jnp.float32
    Wc, Wg1, Wg2, Wcm = p["Wc"], p["Wg1"], p["Wg2"], p["Wcm"]
    _, A, H = Wc.shape
    Z = p["Wmu"].shape[1]
    C = _round_up(A, 8)                 # padded x channel count
    Apad = _round_up(A, 128)            # lane-padded logits width
    Zc = Z + 1
    CW = _round_up(3 * Zc, 8)           # conditioning-pattern width
    M = Bt * L

    # fused conv weights (4C, 2H); slab column block j holds x[:, t + (j-2), :]
    Wbig = jnp.zeros((4 * C, 2 * H), f32)
    for k in range(3):                  # encoder taps: offset k-1 -> block k+1
        j = k + 1
        Wbig = Wbig.at[j * C:j * C + A, 0:H].set(Wc[k].astype(f32))
    for k in range(3):                  # generator x taps: offset k-2 -> block k
        j = k
        Wbig = Wbig.at[j * C:j * C + A, H:2 * H].set(Wg1[k][:A, :].astype(f32))

    # W2 (H, Apad+2Z): [ Wg2 lane-padded to 128 | Wmu | Wvar ]
    W2 = jnp.zeros((H, Apad + 2 * Z), f32)
    W2 = W2.at[:, 0:A].set(Wg2.astype(f32))
    W2 = W2.at[:, Apad:Apad + Z].set(p["Wmu"].astype(f32))
    W2 = W2.at[:, Apad + Z:Apad + 2 * Z].set(p["Wvar"].astype(f32))

    # conditioning expansion (CW, H): rows j*Zc .. j*Zc+Z carry Wg1[j][A, :]
    Wcexp = jnp.zeros((CW, H), f32)
    for j in range(3):
        Wcexp = Wcexp.at[j * Zc:(j + 1) * Zc, :].set(
            jnp.broadcast_to(Wg1[j][A, :].astype(f32)[None, :], (Zc, H)))

    # bias pack (8, 128): row0 bc, row1 bg1, row2 [bmu|bvar], row3 bg2 (lane-padded)
    BW = max(H, 2 * Z, Apad)
    bpk = jnp.zeros((8, BW), f32)
    bpk = bpk.at[0, 0:H].set(p["bc"].astype(f32))
    bpk = bpk.at[1, 0:H].set(p["bg1"].astype(f32))
    bpk = bpk.at[2, 0:Z].set(p["bmu"].astype(f32))
    bpk = bpk.at[2, Z:2 * Z].set(p["bvar"].astype(f32))
    bpk = bpk.at[3, 0:A].set(p["bg2"].astype(f32))

    # per-block row structure: row = b*L + t (b, t local to the block)
    b_idx = jnp.arange(Bt, dtype=jnp.int32)
    r_idx = jnp.arange(M, dtype=jnp.int32)
    poolT = jnp.where(r_idx[None, :] // L == b_idx[:, None],
                      1.0 / L, 0.0).astype(f32)                 # (Bt, M) mean pool
    Rsel = jnp.where(r_idx[:, None] // L == b_idx[None, :],
                     1.0, 0.0).astype(f32)                      # (M, Bt) one-hot

    # conditioning pattern (M, CW): block j = [Wcm[:, t+o_j] ; bcm[t+o_j]],
    # zeroed (causal mask) where t + o_j < 0.
    t_idx = r_idx % L
    WcmT = Wcm.astype(f32).T                                    # (L, Z)
    bcm = p["bcm"].astype(f32)                                  # (L,)
    cpat = jnp.zeros((M, CW), f32)
    for j, o in enumerate((-2, -1, 0)):
        s = t_idx + o
        valid = s >= 0
        sc = jnp.clip(s, 0, L - 1)
        cpat = cpat.at[:, j * Zc:j * Zc + Z].set(
            jnp.where(valid[:, None], WcmT[sc, :], 0.0))
        cpat = cpat.at[:, j * Zc + Z].set(jnp.where(valid, bcm[sc], 0.0))

    return Wbig, W2, Wcexp, bpk, poolT, Rsel, cpat


def protwave_vae_forward(x, eps, p, *, block_batch=None):
    """x: (B, L, A) one-hot-ish float; eps: (B, Z) uniform [0,1).

    Returns (logits[bfloat16, (B,L,A)], z, mu, var)."""
    x = x.astype(jnp.float32)
    eps = eps.astype(jnp.float32)
    B, L, A = x.shape
    Z = p["Wmu"].shape[1]
    C = _round_up(A, 8)
    Kc = 4 * C
    Apad = _round_up(A, 128)
    SW = _round_up(3 * Z, 128)

    # Generation-aware block size: a single grid step (no serial-loop overhead
    # on 1-TC v5e/v6e, full-M MXU occupancy) unless B*L is large, in which case
    # M is capped at 512 rows per step so accumulators stay in vregs and v7x's
    # two cores can split the grid.
    if block_batch is None:
        Bt = min(B, max(1, 512 // L))
    else:
        Bt = max(1, min(block_batch, B))
    if Bt < B:                          # blocked grid needs sublane-divisible blocks
        Bt = min(B, _round_up(Bt, 8))
    M = Bt * L
    Bp = _round_up(B, Bt)
    if Bp != B:                         # pad batch to a multiple of the block
        x = jnp.pad(x, ((0, Bp - B), (0, 0), (0, 0)))
        eps = jnp.pad(eps, ((0, Bp - B), (0, 0)))

    # Wrapper-side im2col (layout plumbing, not compute): channel-pad A->C and
    # stack the four shifted copies (offsets -2,-1,0,+1) along channels.  This
    # removes every in-kernel sublane-shift relayout; the modest extra HBM read
    # for x is negligible next to the lane-padded logits writeback.
    xp = jnp.pad(x, ((0, 0), (2, 1), (0, C - A)))                  # (Bp, L+3, C)
    xslab = jnp.concatenate([xp[:, j:j + L, :] for j in range(4)], axis=-1)
    xslab = xslab.reshape(Bp * L, Kc)                              # (Bp*L, 4C)

    Wbig, W2, Wcexp, bpk, poolT, Rsel, cpat = _pack_params(p, L, Bt)

    const = lambda a: pl.BlockSpec(a.shape, lambda b: (0, 0))

    grid_spec = pltpu.PrefetchScalarGridSpec(
        num_scalar_prefetch=0,
        grid=(Bp // Bt,),
        in_specs=[
            pl.BlockSpec((M, Kc), lambda b: (b, 0)),       # im2col slab rows
            pl.BlockSpec((Bt, Z), lambda b: (b, 0)),       # eps
            const(Wbig),                                   # fused conv weights
            const(W2),                                     # [Wg2 | Wmu | Wvar]
            const(Wcexp),                                  # expanded cond weights
            const(bpk),                                    # bias pack
            const(poolT),                                  # mean-pool matrix
            const(Rsel),                                   # row -> sequence one-hot
            const(cpat),                                   # causal cond pattern
        ],
        out_specs=(
            pl.BlockSpec((M, Apad), lambda b: (b, 0)),     # lane-padded bf16 logits
            pl.BlockSpec((Bt, SW), lambda b: (b, 0)),      # [z | mu | var | 0] f32
        ),
    )

    logits_pad, stats = pl.pallas_call(
        protwave_kernel,
        grid_spec=grid_spec,
        out_shape=(
            jax.ShapeDtypeStruct((Bp * L, Apad), jnp.bfloat16),
            jax.ShapeDtypeStruct((Bp, SW), jnp.float32),
        ),
        compiler_params=pltpu.CompilerParams(
            dimension_semantics=("parallel",)),
    )(xslab, eps, Wbig, W2, Wcexp, bpk, poolT, Rsel, cpat)

    logits_xrc = logits_pad.reshape(Bp, L, Apad)[:B, :, :A]
    z = stats[:B, 0:Z]
    mu = stats[:B, Z:2 * Z]
    var = stats[:B, 2 * Z:3 * Z]
    return logits_xrc, z, mu, var


# ---------------------------------------------------------------------------
# Pure-JAX reference with identical semantics (numerical sanity check).
# ---------------------------------------------------------------------------
def _softplus(x):
    return jnp.maximum(x, 0.0) + jnp.log1p(jnp.exp(-jnp.abs(x)))


def ref_forward(x, eps, p):
    B, L, A = x.shape
    xp = jnp.pad(x, ((0, 0), (1, 1), (0, 0)))
    h = 0.0
    for k in range(3):
        h = h + jnp.einsum("bla,ah->blh", xp[:, k:k + L], p["Wc"][k])
    h = jax.nn.relu(h + p["bc"][None, None, :])
    hbar = h.mean(axis=1)
    mu = hbar @ p["Wmu"] + p["bmu"][None, :]
    var = _softplus(hbar @ p["Wvar"] + p["bvar"][None, :]) + 1e-6
    z = mu + eps * jnp.sqrt(var)
    c = z @ p["Wcm"] + p["bcm"][None, :]                       # (B, L)
    xg = jnp.concatenate([x, c[:, :, None]], axis=-1)          # (B, L, A+1)
    xgp = jnp.pad(xg, ((0, 0), (2, 0), (0, 0)))                # causal left pad
    h2 = 0.0
    for k in range(3):
        h2 = h2 + jnp.einsum("blc,ch->blh", xgp[:, k:k + L], p["Wg1"][k])
    h2 = jax.nn.relu(h2 + p["bg1"][None, None, :])
    logits = jnp.einsum("blh,ha->bla", h2, p["Wg2"]) + p["bg2"][None, None, :]
    return logits, z, mu, var


def make_params(key, A, L, H, Z):
    ks = jax.random.split(key, 12)
    sc = 0.1
    n = lambda k, s: sc * jax.random.normal(k, s, jnp.float32)
    return dict(
        Wc=n(ks[0], (3, A, H)), bc=n(ks[1], (H,)),
        Wmu=n(ks[2], (H, Z)), bmu=n(ks[3], (Z,)),
        Wvar=n(ks[4], (H, Z)), bvar=n(ks[5], (Z,)),
        Wcm=n(ks[6], (Z, L)), bcm=n(ks[7], (L,)),
        Wg1=n(ks[8], (3, A + 1, H)), bg1=n(ks[9], (H,)),
        Wg2=n(ks[10], (H, A)), bg2=n(ks[11], (A,)),
    )


if __name__ == "__main__":
    B, L, A = 16, 16, 21     # batch, protein_len, aa_labels (20 AAs + gap)
    H, Z = 32, 6             # encoder width, z_dim (module default z_dim=6)

    key = jax.random.PRNGKey(0)
    k_par, k_lab, k_eps = jax.random.split(key, 3)

    params = make_params(k_par, A, L, H, Z)
    labels = jax.random.randint(k_lab, (B, L), 0, A)
    x = jax.nn.one_hot(labels, A, dtype=jnp.float32)        # (B, L, A)
    eps = jax.random.uniform(k_eps, (B, Z), jnp.float32)    # torch.rand_like -> U[0,1)

    fwd = jax.jit(protwave_vae_forward)
    logits, z, mu, var = jax.block_until_ready(fwd(x, eps, params))

    # sanity check against the pure-JAX reference
    r_logits, r_z, r_mu, r_var = ref_forward(x, eps, params)
    assert logits.shape == (B, L, A) and logits.dtype == jnp.bfloat16
    assert z.shape == (B, Z) and mu.shape == (B, Z) and var.shape == (B, Z)
    # logits are bf16 (and MXU default precision), stats are f32.
    assert jnp.allclose(logits.astype(jnp.float32), r_logits, rtol=5e-3, atol=5e-3)
    assert jnp.allclose(z, r_z, rtol=2e-3, atol=2e-3)
    assert jnp.allclose(mu, r_mu, rtol=2e-3, atol=2e-3)
    assert jnp.allclose(var, r_var, rtol=2e-3, atol=2e-3)

    print("KERNEL_OK")
</pallas_src>

<mosaic_0001>
module attributes {stable_mosaic.version = 11 : i64} {
  func.func @protwave_kernel(%arg0: i32, %arg1: memref<256x96xf32, #tpu.memory_space<vmem>>, %arg2: memref<16x6xf32, #tpu.memory_space<vmem>>, %arg3: memref<96x64xf32, #tpu.memory_space<vmem>>, %arg4: memref<32x140xf32, #tpu.memory_space<vmem>>, %arg5: memref<24x32xf32, #tpu.memory_space<vmem>>, %arg6: memref<8x128xf32, #tpu.memory_space<vmem>>, %arg7: memref<16x256xf32, #tpu.memory_space<vmem>>, %arg8: memref<256x16xf32, #tpu.memory_space<vmem>>, %arg9: memref<256x24xf32, #tpu.memory_space<vmem>>, %arg10: memref<256x128xbf16, #tpu.memory_space<vmem>>, %arg11: memref<16x128xf32, #tpu.memory_space<vmem>>) attributes {dimension_semantics = [#tpu.dimension_semantics<parallel>], iteration_bounds = array<i64: 1>, scalar_prefetch = 0 : i64, scratch_operands = 0 : i64, tpu.core_type = #tpu.core_type<tc>, window_params = [{transform_indices = @transform_0, window_bounds = array<i64: 256, 96>}, {transform_indices = @transform_1, window_bounds = array<i64: 16, 6>}, {pipeline_mode = #tpu.pipeline_mode<synchronous>, transform_indices = @transform_2, window_bounds = array<i64: 96, 64>}, {pipeline_mode = #tpu.pipeline_mode<synchronous>, transform_indices = @transform_3, window_bounds = array<i64: 32, 140>}, {pipeline_mode = #tpu.pipeline_mode<synchronous>, transform_indices = @transform_4, window_bounds = array<i64: 24, 32>}, {pipeline_mode = #tpu.pipeline_mode<synchronous>, transform_indices = @transform_5, window_bounds = array<i64: 8, 128>}, {pipeline_mode = #tpu.pipeline_mode<synchronous>, transform_indices = @transform_6, window_bounds = array<i64: 16, 256>}, {pipeline_mode = #tpu.pipeline_mode<synchronous>, transform_indices = @transform_7, window_bounds = array<i64: 256, 16>}, {pipeline_mode = #tpu.pipeline_mode<synchronous>, transform_indices = @transform_8, window_bounds = array<i64: 256, 24>}, {transform_indices = @transform_9, window_bounds = array<i64: 256, 128>}, {transform_indices = @transform_10, window_bounds = array<i64: 16, 128>}]} {
    %c0 = arith.constant 0 : index
    %c0_0 = arith.constant 0 : index
    %0 = vector.load %arg1[%c0, %c0_0] : memref<256x96xf32, #tpu.memory_space<vmem>>, vector<256x96xf32>
    %c0_1 = arith.constant 0 : index
    %c0_2 = arith.constant 0 : index
    %1 = vector.load %arg3[%c0_1, %c0_2] : memref<96x64xf32, #tpu.memory_space<vmem>>, vector<96x64xf32>
    %cst = arith.constant dense<0.000000e+00> : vector<256x64xf32>
    %2 = tpu.matmul %0, %1, %cst {dimension_numbers = #tpu.dot_dimension_numbers<[1], [0], [0], [1], [0, 0, 1, 1], [], []>} : vector<256x96xf32>, vector<96x64xf32>, vector<256x64xf32> -> vector<256x64xf32>
    %3 = vector.extract_strided_slice %2 {offsets = [0, 0], sizes = [256, 32], strides = [1, 1]} : vector<256x64xf32> to vector<256x32xf32>
    %c0_3 = arith.constant 0 : index
    %c0_4 = arith.constant 0 : index
    %4 = vector.load %arg6[%c0_3, %c0_4] : memref<8x128xf32, #tpu.memory_space<vmem>>, vector<1x32xf32>
    %5 = vector.broadcast %4 : vector<1x32xf32> to vector<256x32xf32>
    %6 = arith.addf %3, %5 : vector<256x32xf32>
    %cst_5 = arith.constant 0.000000e+00 : f32
    %7 = vector.broadcast %cst_5 : f32 to vector<256x32xf32>
    %8 = arith.maximumf %6, %7 : vector<256x32xf32>
    %c0_6 = arith.constant 0 : index
    %c0_7 = arith.constant 0 : index
    %9 = vector.load %arg7[%c0_6, %c0_7] : memref<16x256xf32, #tpu.memory_space<vmem>>, vector<16x256xf32>
    %cst_8 = arith.constant dense<0.000000e+00> : vector<16x32xf32>
    %10 = tpu.matmul %9, %8, %cst_8 {dimension_numbers = #tpu.dot_dimension_numbers<[1], [0], [0], [1], [0, 0, 1, 1], [], []>} : vector<16x256xf32>, vector<256x32xf32>, vector<16x32xf32> -> vector<16x32xf32>
    %c0_9 = arith.constant 0 : index
    %c128 = arith.constant 128 : index
    %11 = vector.load %arg4[%c0_9, %c128] : memref<32x140xf32, #tpu.memory_space<vmem>>, vector<32x12xf32>
    %cst_10 = arith.constant dense<0.000000e+00> : vector<16x12xf32>
    %12 = tpu.matmul %10, %11, %cst_10 {dimension_numbers = #tpu.dot_dimension_numbers<[1], [0], [0], [1], [0, 0, 1, 1], [], []>} : vector<16x32xf32>, vector<32x12xf32>, vector<16x12xf32> -> vector<16x12xf32>
    %c2 = arith.constant 2 : index
    %c0_11 = arith.constant 0 : index
    %13 = vector.load %arg6[%c2, %c0_11] : memref<8x128xf32, #tpu.memory_space<vmem>>, vector<1x12xf32>
    %14 = vector.broadcast %13 : vector<1x12xf32> to vector<16x12xf32>
    %15 = arith.addf %12, %14 : vector<16x12xf32>
    %16 = vector.extract_strided_slice %15 {offsets = [0, 0], sizes = [16, 6], strides = [1, 1]} : vector<16x12xf32> to vector<16x6xf32>
    %17 = vector.extract_strided_slice %15 {offsets = [0, 6], sizes = [16, 6], strides = [1, 1]} : vector<16x12xf32> to vector<16x6xf32>
    %cst_12 = arith.constant 0.000000e+00 : f32
    %18 = vector.broadcast %cst_12 : f32 to vector<16x6xf32>
    %19 = arith.maximumf %17, %18 : vector<16x6xf32>
    %20 = math.absf %17 : vector<16x6xf32>
    %cst_13 = arith.constant 0.000000e+00 : f32
    %21 = vector.broadcast %cst_13 : f32 to vector<16x6xf32>
    %22 = arith.subf %21, %20 : vector<16x6xf32>
    %23 = math.exp %22 : vector<16x6xf32>
    %24 = math.log1p %23 : vector<16x6xf32>
    %25 = arith.addf %19, %24 : vector<16x6xf32>
    %cst_14 = arith.constant 9.99999997E-7 : f32
    %26 = vector.broadcast %cst_14 : f32 to vector<16x6xf32>
    %27 = arith.addf %25, %26 : vector<16x6xf32>
    %c0_15 = arith.constant 0 : index
    %c0_16 = arith.constant 0 : index
    %28 = vector.load %arg2[%c0_15, %c0_16] : memref<16x6xf32, #tpu.memory_space<vmem>>, vector<16x6xf32>
    %29 = math.sqrt %27 : vector<16x6xf32>
    %30 = arith.mulf %28, %29 : vector<16x6xf32>
    %31 = arith.addf %16, %30 : vector<16x6xf32>
    %cst_17 = arith.constant 1.000000e+00 : f32
    %32 = vector.broadcast %cst_17 : f32 to vector<16x1xf32>
    %33 = tpu.concatenate %31, %32 in 1 : vector<16x6xf32>, vector<16x1xf32> -> vector<16x7xf32>
    %cst_18 = arith.constant 0.000000e+00 : f32
    %34 = vector.broadcast %cst_18 : f32 to vector<16x3xf32>
    %35 = tpu.concatenate %33, %33, %33, %34 in 1 : vector<16x7xf32>, vector<16x7xf32>, vector<16x7xf32>, vector<16x3xf32> -> vector<16x24xf32>
    %c0_19 = arith.constant 0 : index
    %c0_20 = arith.constant 0 : index
    %36 = vector.load %arg8[%c0_19, %c0_20] : memref<256x16xf32, #tpu.memory_space<vmem>>, vector<256x16xf32>
    %cst_21 = arith.constant dense<0.000000e+00> : vector<256x24xf32>
    %37 = tpu.matmul %36, %35, %cst_21 {dimension_numbers = #tpu.dot_dimension_numbers<[1], [0], [0], [1], [0, 0, 1, 1], [], []>} : vector<256x16xf32>, vector<16x24xf32>, vector<256x24xf32> -> vector<256x24xf32>
    %c0_22 = arith.constant 0 : index
    %c0_23 = arith.constant 0 : index
    %38 = vector.load %arg9[%c0_22, %c0_23] : memref<256x24xf32, #tpu.memory_space<vmem>>, vector<256x24xf32>
    %39 = arith.mulf %37, %38 : vector<256x24xf32>
    %c0_24 = arith.constant 0 : index
    %c0_25 = arith.constant 0 : index
    %40 = vector.load %arg5[%c0_24, %c0_25] : memref<24x32xf32, #tpu.memory_space<vmem>>, vector<24x32xf32>
    %cst_26 = arith.constant dense<0.000000e+00> : vector<256x32xf32>
    %41 = tpu.matmul %39, %40, %cst_26 {dimension_numbers = #tpu.dot_dimension_numbers<[1], [0], [0], [1], [0, 0, 1, 1], [], []>} : vector<256x24xf32>, vector<24x32xf32>, vector<256x32xf32> -> vector<256x32xf32>
    %42 = vector.extract_strided_slice %2 {offsets = [0, 32], sizes = [256, 32], strides = [1, 1]} : vector<256x64xf32> to vector<256x32xf32>
    %43 = arith.addf %42, %41 : vector<256x32xf32>
    %c1 = arith.constant 1 : index
    %c0_27 = arith.constant 0 : index
    %44 = vector.load %arg6[%c1, %c0_27] : memref<8x128xf32, #tpu.memory_space<vmem>>, vector<1x32xf32>
    %45 = vector.broadcast %44 : vector<1x32xf32> to vector<256x32xf32>
    %46 = arith.addf %43, %45 : vector<256x32xf32>
    %cst_28 = arith.constant 0.000000e+00 : f32
    %47 = vector.broadcast %cst_28 : f32 to vector<256x32xf32>
    %48 = arith.maximumf %46, %47 : vector<256x32xf32>
    %c0_29 = arith.constant 0 : index
    %c0_30 = arith.constant 0 : index
    %49 = vector.load %arg4[%c0_29, %c0_30] : memref<32x140xf32, #tpu.memory_space<vmem>>, vector<32x128xf32>
    %cst_31 = arith.constant dense<0.000000e+00> : vector<256x128xf32>
    %50 = tpu.matmul %48, %49, %cst_31 {dimension_numbers = #tpu.dot_dimension_numbers<[1], [0], [0], [1], [0, 0, 1, 1], [], []>} : vector<256x32xf32>, vector<32x128xf32>, vector<256x128xf32> -> vector<256x128xf32>
    %c3 = arith.constant 3 : index
    %c0_32 = arith.constant 0 : index
    %51 = vector.load %arg6[%c3, %c0_32] : memref<8x128xf32, #tpu.memory_space<vmem>>, vector<1x128xf32>
    %52 = vector.broadcast %51 : vector<1x128xf32> to vector<256x128xf32>
    %53 = arith.addf %50, %52 : vector<256x128xf32>
    %54 = arith.truncf %53 : vector<256x128xf32> to vector<256x128xbf16>
    %c0_33 = arith.constant 0 : index
    %c0_34 = arith.constant 0 : index
    %55 = vector.load %arg10[%c0_33, %c0_34] : memref<256x128xbf16, #tpu.memory_space<vmem>>, vector<256x128xbf16>
    tpu.vector_store %arg10[%c0_33, %c0_34], %54 {strides = array<i32>} : memref<256x128xbf16, #tpu.memory_space<vmem>>, vector<256x128xbf16>,
    %cst_35 = arith.constant 0.000000e+00 : f32
    %56 = vector.broadcast %cst_35 : f32 to vector<16x110xf32>
    %57 = tpu.concatenate %31, %16, %27, %56 in 1 : vector<16x6xf32>, vector<16x6xf32>, vector<16x6xf32>, vector<16x110xf32> -> vector<16x128xf32>
    %c0_36 = arith.constant 0 : index
    %c0_37 = arith.constant 0 : index
    %58 = vector.load %arg11[%c0_36, %c0_37] : memref<16x128xf32, #tpu.memory_space<vmem>>, vector<16x128xf32>
    tpu.vector_store %arg11[%c0_36, %c0_37], %57 {strides = array<i32>} : memref<16x128xf32, #tpu.memory_space<vmem>>, vector<16x128xf32>,
    return
  }
  func.func @transform_0(%arg0: i32) -> (i32, i32) {
    %c0_i32 = arith.constant 0 : i32
    %c0_i32_0 = arith.constant 0 : i32
    return %arg0, %c0_i32 : i32, i32
  }
  func.func @transform_1(%arg0: i32) -> (i32, i32) {
    %c0_i32 = arith.constant 0 : i32
    %c0_i32_0 = arith.constant 0 : i32
    return %arg0, %c0_i32 : i32, i32
  }
  func.func @transform_2(%arg0: i32) -> (i32, i32) {
    %c0_i32 = arith.constant 0 : i32
    %c0_i32_0 = arith.constant 0 : i32
    %c0_i32_1 = arith.constant 0 : i32
    return %c0_i32, %c0_i32_0 : i32, i32
  }
  func.func @transform_3(%arg0: i32) -> (i32, i32) {
    %c0_i32 = arith.constant 0 : i32
    %c0_i32_0 = arith.constant 0 : i32
    %c0_i32_1 = arith.constant 0 : i32
    return %c0_i32, %c0_i32_0 : i32, i32
  }
  func.func @transform_4(%arg0: i32) -> (i32, i32) {
    %c0_i32 = arith.constant 0 : i32
    %c0_i32_0 = arith.constant 0 : i32
    %c0_i32_1 = arith.constant 0 : i32
    return %c0_i32, %c0_i32_0 : i32, i32
  }
  func.func @transform_5(%arg0: i32) -> (i32, i32) {
    %c0_i32 = arith.constant 0 : i32
    %c0_i32_0 = arith.constant 0 : i32
    %c0_i32_1 = arith.constant 0 : i32
    return %c0_i32, %c0_i32_0 : i32, i32
  }
  func.func @transform_6(%arg0: i32) -> (i32, i32) {
    %c0_i32 = arith.constant 0 : i32
    %c0_i32_0 = arith.constant 0 : i32
    %c0_i32_1 = arith.constant 0 : i32
    return %c0_i32, %c0_i32_0 : i32, i32
  }
  func.func @transform_7(%arg0: i32) -> (i32, i32) {
    %c0_i32 = arith.constant 0 : i32
    %c0_i32_0 = arith.constant 0 : i32
    %c0_i32_1 = arith.constant 0 : i32
    return %c0_i32, %c0_i32_0 : i32, i32
  }
  func.func @transform_8(%arg0: i32) -> (i32, i32) {
    %c0_i32 = arith.constant 0 : i32
    %c0_i32_0 = arith.constant 0 : i32
    %c0_i32_1 = arith.constant 0 : i32
    return %c0_i32, %c0_i32_0 : i32, i32
  }
  func.func @transform_9(%arg0: i32) -> (i32, i32) {
    %c0_i32 = arith.constant 0 : i32
    %c0_i32_0 = arith.constant 0 : i32
    return %arg0, %c0_i32 : i32, i32
  }
  func.func @transform_10(%arg0: i32) -> (i32, i32) {
    %c0_i32 = arith.constant 0 : i32
    %c0_i32_0 = arith.constant 0 : i32
    return %arg0, %c0_i32 : i32, i32
  }
}

</mosaic_0001>

<bundles_post_ra>
// kernel: protwave_vae_forward.1
= control target key start
LH: loop header
LB: loop body
LE: loop exit
PB: predicated region body
PF: predicated region fallthrough
CT: control target
= control target key end

     0   :  { %vm79_vm0 = vcmask 785408   ;;  %s4011_s0 = inlined_call_operand.vmem [shape: f32[256,96], index: 0, kind: input, shape index: {}]   ;;  %s4012_s1 = inlined_call_operand.vmem [shape: f32[16,6], index: 1, kind: input, shape index: {}]   ;;  %s4013_s2 = inlined_call_operand.vmem [shape: f32[96,64], index: 2, kind: input, shape index: {}]   ;;  %s4014_s3 = inlined_call_operand.vmem [shape: f32[32,140], index: 3, kind: input, shape index: {}]   ;;  %s4015_s4 = inlined_call_operand.vmem [shape: f32[24,32], index: 4, kind: input, shape index: {}]   ;;  %s4016_s5 = inlined_call_operand.vmem [shape: f32[8,128], index: 5, kind: input, shape index: {}]   ;;  %s4017_s6 = inlined_call_operand.vmem [shape: f32[16,256], index: 6, kind: input, shape index: {}]   ;;  %s4018_s7 = inlined_call_operand.vmem [shape: f32[256,16], index: 7, kind: input, shape index: {}]   ;;  %s4019_s8 = inlined_call_operand.vmem [shape: f32[256,24], index: 8, kind: input, shape index: {}]   ;;  %s4020_s9 = inlined_call_operand.hbm [shape: bf16[256,128], index: 9, kind: output, shape index: {0}]   ;;  %s4021_s10 = inlined_call_operand.vmem [shape: f32[16,128], index: 10, kind: output, shape index: {1}]  }
   0x1   :  { %v78_v0 = vld [vmem:[%s4013_s2 + $0x58] sm:$0xff]  ;;  %v77_v1 = vld [vmem:[%s4013_s2 + $0x50] sm:$0xff]  ;;  %v76_v2 = vld [vmem:[%s4013_s2 + $0x48] sm:$0xff] }
   0x2   :  { %2790 = vmatprep.subr.mxu0 %v78_v0  ;;  %v75_v3 = vld [vmem:[%s4013_s2 + $0x40] sm:$0xff]  ;;  %v74_v5 = vld [vmem:[%s4013_s2 + $0x38] sm:$0xff]  ;;  %v73_v6 = vld [vmem:[%s4013_s2 + $0x30] sm:$0xff] }
   0x3   :  { %2791 = vmatpush3.msra.mxu0 %v78_v0  ;;  %v35_v4 = vld [vmem:[%s4011_s0] sm:$0xff]  ;;  %v72_v7 = vld [vmem:[%s4013_s2 + $0x28] sm:$0xff]  ;;  %v70_v9 = vld [vmem:[%s4013_s2 + $0x18] sm:$0xff] }
   0x4   :  { %2792 = vmatprep.subr.mxu0 %v77_v1  ;;  %2814 = vmatprep.mubr.msk.f32.mxu0 %vm79_vm0, %v35_v4  ;;  %v71_v8 = vld [vmem:[%s4013_s2 + $0x20] sm:$0xff] }
   0x5   :  { %2793 = vmatpush3.msra.mxu0 %v77_v1 }
   0x6   :  { %2794 = vmatprep.subr.mxu0 %v76_v2 }
   0x7   :  { %2795 = vmatpush3.msra.mxu0 %v76_v2 }
   0x8   :  { %2796 = vmatprep.subr.mxu0 %v75_v3 }
   0x9   :  { %2797 = vmatpush3.msra.mxu0 %v75_v3 }
   0xa   :  { %2798 = vmatprep.subr.mxu0 %v74_v5 }
   0xb   :  { %2799 = vmatpush3.msra.mxu0 %v74_v5 }
   0xc   :  { %2800 = vmatprep.subr.mxu0 %v73_v6 }
   0xd   :  { %2801 = vmatpush3.msra.mxu0 %v73_v6 }
   0xe   :  { %2802 = vmatprep.subr.mxu0 %v72_v7 }
   0xf   :  { %2803 = vmatpush3.msra.mxu0 %v72_v7 }
  0x10   :  { %16 = vsyncpa [#allocation3], 0  ;;  %2804 = vmatprep.subr.mxu0 %v71_v8  ;;  %v69_v10 = vld [vmem:[%s4013_s2 + $0x10] sm:$0xff]  ;;  %v68_v11 = vld [vmem:[%s4013_s2 + $0x8] sm:$0xff]  ;;  %vm558_vm1 = vcmask 261120   ;;  %s3084_s15 = smov 122  }
  0x11   :  { %2805 = vmatpush3.msra.mxu0 %v71_v8  ;;  %v67_v12 = vld [vmem:[%s4013_s2] sm:$0xff]  ;;  %v36_v13 = vld [vmem:[%s4011_s0 + $0x8] sm:$0xff]  ;;  %v37_v14 = vld [vmem:[%s4011_s0 + $0x10] sm:$0xff]  ;;  %vm700_vm8 = vcmask 48128   ;;  %vm758_vm9 = vcmask 130048   ;;  %s3085_s21 = smov 7  }
  0x12   :  { %2806 = vmatprep.subr.mxu0 %v70_v9  ;;  %v38_v15 = vld [vmem:[%s4011_s0 + $0x18] sm:$0xff]  ;;  %v39_v16 = vld [vmem:[%s4011_s0 + $0x20] sm:$0xff]  ;;  %v40_v17 = vld [vmem:[%s4011_s0 + $0x28] sm:$0xff]  ;;  %vm717_vm10 = vcmask 56320   ;;  %vm720_vm11 = vcmask 113664   ;;  %vm723_vm12 = vcmask 171008  }
  0x13   :  { %2807 = vmatpush3.msra.mxu0 %v70_v9  ;;  %v41_v18 = vld [vmem:[%s4011_s0 + $0x30] sm:$0xff]  ;;  %v42_v19 = vld [vmem:[%s4011_s0 + $0x38] sm:$0xff]  ;;  %v43_v20 = vld [vmem:[%s4011_s0 + $0x40] sm:$0xff]  ;;  %vm1147_vm13 = vcmask 195584   ;;  %s3087_s27 = smov 32   ;;  %s3089_s16 = smov 6  }
  0x14   :  { %2808 = vmatprep.subr.mxu0 %v69_v10  ;;  %v44_v21 = vld [vmem:[%s4011_s0 + $0x48] sm:$0xff]  ;;  %v45_v22 = vld [vmem:[%s4011_s0 + $0x50] sm:$0xff]  ;;  %v46_v23 = vld [vmem:[%s4011_s0 + $0x58] sm:$0xff]  ;;  %vm2274_vm14 = vcmask 97280   ;;  %vm2277_vm15 = vcmask 146432  }
  0x15   :  { %2809 = vmatpush3.msra.mxu0 %v69_v10  ;;  %v47_v24 = vld [vmem:[%s4011_s0 + $0x60] sm:$0xff]  ;;  %v48_v25 = vld [vmem:[%s4011_s0 + $0x68] sm:$0xff]  ;;  %v49_v26 = vld [vmem:[%s4011_s0 + $0x70] sm:$0xff] }
  0x16   :  { %2810 = vmatprep.subr.mxu0 %v68_v11  ;;  %v50_v27 = vld [vmem:[%s4011_s0 + $0x78] sm:$0xff]  ;;  %v51_v28 = vld [vmem:[%s4011_s0 + $0x80] sm:$0xff]  ;;  %v52_v29 = vld [vmem:[%s4011_s0 + $0x88] sm:$0xff] }
  0x17   :  { %2811 = vmatpush3.msra.mxu0 %v68_v11  ;;  %v53_v30 = vld [vmem:[%s4011_s0 + $0x90] sm:$0xff]  ;;  %v54_v31 = vld [vmem:[%s4011_s0 + $0x98] sm:$0xff]  ;;  %v55_v32 = vld [vmem:[%s4011_s0 + $0xa0] sm:$0xff] }
  0x18   :  { %2812 = vmatprep.subr.mxu0 %v67_v12  ;;  %v56_v33 = vld [vmem:[%s4011_s0 + $0xa8] sm:$0xff]  ;;  %v57_v34 = vld [vmem:[%s4011_s0 + $0xb0] sm:$0xff]  ;;  %v58_v35 = vld [vmem:[%s4011_s0 + $0xb8] sm:$0xff] }
  0x19   :  { %2813 = vmatpush3.msra.mxu0 %v67_v12  ;;  %v59_v36 = vld [vmem:[%s4011_s0 + $0xc0] sm:$0xff]  ;;  %v60_v37 = vld [vmem:[%s4011_s0 + $0xc8] sm:$0xff]  ;;  %v61_v38 = vld [vmem:[%s4011_s0 + $0xd0] sm:$0xff] }
  0x1a   :  { %2815 = vmatmul.mubr.msk.f32.vlgmr.msra.gmra.mxu0 %vm79_vm0, %v36_v13  ;;  %v62_v39 = vld [vmem:[%s4011_s0 + $0xd8] sm:$0xff]  ;;  %v63_v40 = vld [vmem:[%s4011_s0 + $0xe0] sm:$0xff]  ;;  %v64_v41 = vld [vmem:[%s4011_s0 + $0xe8] sm:$0xff] }
  0x1b   :  { %2817 = vmatprep.mubr.msk.f32.mxu0 %vm79_vm0, %v37_v14  ;;  %v65_v42 = vld [vmem:[%s4011_s0 + $0xf0] sm:$0xff]  ;;  %v66_v43 = vld [vmem:[%s4011_s0 + $0xf8] sm:$0xff]  ;;  %v471_v44 = vld [vmem:[%s4017_s6 + $0x8] sm:$0xff] }
  0x1c   :  { %v3378_v11 = vld [vmem:[%s4016_s5] ss:$0 sm:$0xff] }
  0x1e   :  { %2818 = vmatmul.mubr.msk.f32.gmra.mxu0 %vm79_vm0, %v38_v15 }
  0x1f   :  { %2820 = vmatprep.mubr.msk.f32.mxu0 %vm79_vm0, %v39_v16 }
  0x22   :  { %2821 = vmatmul.mubr.msk.f32.gmra.mxu0 %vm79_vm0, %v40_v17 }
  0x23   :  { %2823 = vmatprep.mubr.msk.f32.mxu0 %vm79_vm0, %v41_v18 }
  0x26   :  { %2824 = vmatmul.mubr.msk.f32.gmra.mxu0 %vm79_vm0, %v42_v19 }
  0x27   :  { %2826 = vmatprep.mubr.msk.f32.mxu0 %vm79_vm0, %v43_v20 }
  0x2a   :  { %2827 = vmatmul.mubr.msk.f32.gmra.mxu0 %vm79_vm0, %v44_v21 }
  0x2b   :  { %2829 = vmatprep.mubr.msk.f32.mxu0 %vm79_vm0, %v45_v22 }
  0x2e   :  { %2830 = vmatmul.mubr.msk.f32.gmra.mxu0 %vm79_vm0, %v46_v23 }
  0x2f   :  { %2832 = vmatprep.mubr.msk.f32.mxu0 %vm79_vm0, %v47_v24 }
  0x32   :  { %2833 = vmatmul.mubr.msk.f32.gmra.mxu0 %vm79_vm0, %v48_v25 }
  0x33   :  { %2835 = vmatprep.mubr.msk.f32.mxu0 %vm79_vm0, %v49_v26 }
  0x36   :  { %2836 = vmatmul.mubr.msk.f32.gmra.mxu0 %vm79_vm0, %v50_v27 }
  0x37   :  { %2838 = vmatprep.mubr.msk.f32.mxu0 %vm79_vm0, %v51_v28 }
  0x3a   :  { %2839 = vmatmul.mubr.msk.f32.gmra.mxu0 %vm79_vm0, %v52_v29 }
  0x3b   :  { %2841 = vmatprep.mubr.msk.f32.mxu0 %vm79_vm0, %v53_v30 }
  0x3e   :  { %2842 = vmatmul.mubr.msk.f32.gmra.mxu0 %vm79_vm0, %v54_v31 }
  0x3f   :  { %2844 = vmatprep.mubr.msk.f32.mxu0 %vm79_vm0, %v55_v32 }
  0x42   :  { %2845 = vmatmul.mubr.msk.f32.gmra.mxu0 %vm79_vm0, %v56_v33 }
  0x43   :  { %2847 = vmatprep.mubr.msk.f32.mxu0 %vm79_vm0, %v57_v34 }
  0x46   :  { %2848 = vmatmul.mubr.msk.f32.gmra.mxu0 %vm79_vm0, %v58_v35 }
  0x47   :  { %2850 = vmatprep.mubr.msk.f32.mxu0 %vm79_vm0, %v59_v36 }
  0x4a   :  { %2851 = vmatmul.mubr.msk.f32.gmra.mxu0 %vm79_vm0, %v60_v37 }
  0x4b   :  { %2853 = vmatprep.mubr.msk.f32.mxu0 %vm79_vm0, %v61_v38 }
  0x4e   :  { %2854 = vmatmul.mubr.msk.f32.gmra.mxu0 %vm79_vm0, %v62_v39 }
  0x4f   :  { %2856 = vmatprep.mubr.msk.f32.mxu0 %vm79_vm0, %v63_v40 }
  0x52   :  { %2857 = vmatmul.mubr.msk.f32.gmra.mxu0 %vm79_vm0, %v64_v41 }
  0x53   :  { %2859 = vmatprep.mubr.msk.f32.mxu0 %vm79_vm0, %v65_v42 }
  0x56   :  { %2860 = vmatmul.mubr.msk.f32.gmra.mxu0 %vm79_vm0, %v66_v43 }
  0x57   :  { %538 = vmatprep.mubr.f32.mxu0 %v471_v44 }
  0xda   :  { %v3315_v45 = vpop.f32.mrf.mxu0 }
  0xdc   :  { %v3317_v46 = vpop.f32.mrf.mxu0 }
  0xde   :  { %v3319_v47 = vpop.f32.mrf.mxu0 }
  0xe0   :  { %v3321_v48 = vpop.f32.mrf.mxu0 }
  0xe2   :  { %v3323_v49 = vpop.f32.mrf.mxu0 }
  0xe4   :  { %v3325_v50 = vpop.f32.mrf.mxu0 }
  0xe6   :  { %v3327_v51 = vpop.f32.mrf.mxu0 }
  0xe7   :  { %v413_v44 = vadd.f32 %v3327_v51, %v3378_v11 }
  0xe8   :  { %v3329_v52 = vpop.f32.mrf.mxu0 }
  0xea   :  { %v3331_v53 = vpop.f32.mrf.mxu0 }
  0xeb   :  { %v415_v36 = vadd.f32 %v3331_v53, %v3378_v11 }
  0xec   :  { %v3333_v54 = vpop.f32.mrf.mxu0 }
  0xed   :  { %v414_v40 = vadd.f32 %v3378_v11, %v3333_v54 }
  0xee   :  { %v3335_v55 = vpop.f32.mrf.mxu0 }
  0xef   :  { %v417_v28 = vadd.f32 %v3335_v55, %v3378_v11 }
  0xf0   :  { %v3337_v56 = vpop.f32.mrf.mxu0 }
  0xf1   :  { %v416_v32 = vadd.f32 %v3378_v11, %v3337_v56  ;;  %v449_v37 = vmax.f32 %v417_v28, 0.0 }
  0xf2   :  { %v3339_v57 = vpop.f32.mrf.mxu0 }
  0xf3   :  { %v419_v20 = vadd.f32 %v3339_v57, %v3378_v11  ;;  %v448_v41 = vmax.f32 %v416_v32, 0.0 }
  0xf4   :  { %v3341_v58 = vpop.f32.mrf.mxu0 }
  0xf5   :  { %v418_v24 = vadd.f32 %v3378_v11, %v3341_v58  ;;  %v451_v29 = vmax.f32 %v419_v20, 0.0 }
  0xf6   :  { %v3343_v59 = vpop.f32.mrf.mxu0 }
  0xf7   :  { %v421_v12 = vadd.f32 %v3343_v59, %v3378_v11  ;;  %v450_v33 = vmax.f32 %v418_v24, 0.0 }
  0xf8   :  { %v3345_v60 = vpop.f32.mrf.mxu0 }
  0xf9   :  { %v420_v15 = vadd.f32 %v3378_v11, %v3345_v60  ;;  %v453_v21 = vmax.f32 %v421_v12, 0.0  ;;  %v447_v12 = vmax.f32 %v415_v36, 0.0 }
  0xfa   :  { %v3347_v61 = vpop.f32.mrf.mxu0 }
  0xfb   :  { %v452_v25 = vmax.f32 %v420_v15, 0.0 }
  0xfc   :  { %v3349_v62 = vpop.f32.mrf.mxu0 }
  0xfe   :  { %v3351_v63 = vpop.f32.mrf.mxu0 }
 0x100   :  { %v3353_v0 = vpop.f32.mrf.mxu0 }
 0x102   :  { %v3355_v1 = vpop.f32.mrf.mxu0 }
 0x104   :  { %v3357_v2 = vpop.f32.mrf.mxu0 }
 0x106   :  { %v3359_v3 = vpop.f32.mrf.mxu0 }
 0x107   :  { %v429_v42 = vadd.f32 %v3359_v3, %v3378_v11 }
 0x108   :  { %v3361_v4 = vpop.f32.mrf.mxu0 }
 0x109   :  { %v461_v20 = vmax.f32 %v429_v42, 0.0 }
 0x10a   :  { %v3363_v5 = vpop.f32.mrf.mxu0 }
 0x10b   :  { %v431_v34 = vadd.f32 %v3363_v5, %v3378_v11 }
 0x10c   :  { %v3365_v6 = vpop.f32.mrf.mxu0 }
 0x10d   :  { %v430_v38 = vadd.f32 %v3378_v11, %v3365_v6  ;;  %v463_v43 = vmax.f32 %v431_v34, 0.0 }
 0x10e   :  { %v3367_v7 = vpop.f32.mrf.mxu0 }
 0x10f   :  { %v433_v26 = vadd.f32 %v3367_v7, %v3378_v11  ;;  %v462_v15 = vmax.f32 %v430_v38, 0.0 }
 0x110   :  { %v3369_v8 = vpop.f32.mrf.mxu0 }
 0x111   :  { %v432_v30 = vadd.f32 %v3378_v11, %v3369_v8  ;;  %v465_v35 = vmax.f32 %v433_v26, 0.0 }
 0x112   :  { %v3371_v9 = vpop.f32.mrf.mxu0 }
 0x113   :  { %v435_v17 = vadd.f32 %v3371_v9, %v3378_v11  ;;  %v464_v39 = vmax.f32 %v432_v30, 0.0 }
 0x114   :  { %v3373_v10 = vpop.f32.mrf.mxu0 }
 0x115   :  { %v434_v22 = vadd.f32 %v3378_v11, %v3373_v10  ;;  %v467_v27 = vmax.f32 %v435_v17, 0.0  ;;  %v412_v17 = vadd.f32 %v3378_v11, %v3329_v52 }
 0x116   :  { %v3382_v13 = vpop.f32.mrf.mxu0 }
 0x117   :  { %v437_v14 = vadd.f32 %v3382_v13, %v3378_v11  ;;  %v466_v31 = vmax.f32 %v434_v22, 0.0  ;;  %v445_v22 = vmax.f32 %v413_v44, 0.0  ;;  %v444_v26 = vmax.f32 %v412_v17, 0.0  ;;  %v473_v17 = vld [vmem:[%s4017_s6 + $0x18] sm:$0xff] }
 0x118   :  { %v3388_v16 = vpop.f32.mrf.mxu0 }
 0x119   :  { %v469_v18 = vmax.f32 %v437_v14, 0.0  ;;  %v436_v19 = vadd.f32 %v3378_v11, %v3388_v16  ;;  %v428_v14 = vadd.f32 %v3378_v11, %v3361_v4 }
 0x11b   :  { %v468_v23 = vmax.f32 %v436_v19, 0.0  ;;  %2641 = vmatprep.subr.mxu0 %v469_v18  ;;  %v446_v18 = vmax.f32 %v414_v40, 0.0  ;;  %v427_v19 = vadd.f32 %v3355_v1, %v3378_v11  ;;  %v460_v24 = vmax.f32 %v428_v14, 0.0 }
 0x11c   :  { %2642 = vmatpush3.msra.mxu0 %v453_v21  ;;  %v411_v21 = vadd.f32 %v3323_v49, %v3378_v11 }
 0x11d   :  { %2643 = vmatprep.subr.mxu0 %v468_v23  ;;  %v426_v23 = vadd.f32 %v3378_v11, %v3357_v2  ;;  %v459_v28 = vmax.f32 %v427_v19, 0.0  ;;  %v551_v19 = vld [vmem:[%s4014_s3 + $0x28] sm:$0xff] }
 0x11e   :  { %2644 = vmatpush3.msra.mxu0 %v452_v25  ;;  %v410_v25 = vadd.f32 %v3378_v11, %v3325_v50  ;;  %v443_v30 = vmax.f32 %v411_v21, 0.0  ;;  %v549_v21 = vld [vmem:[%s4014_s3 + $0x8] sm:$0xff] }
 0x11f   :  { %2645 = vmatprep.subr.mxu0 %v467_v27  ;;  %v425_v27 = vadd.f32 %v3351_v63, %v3378_v11  ;;  %v458_v32 = vmax.f32 %v426_v23, 0.0 }
 0x120   :  { %2646 = vmatpush3.msra.mxu0 %v451_v29  ;;  %v409_v29 = vadd.f32 %v3319_v47, %v3378_v11  ;;  %v442_v34 = vmax.f32 %v410_v25, 0.0 }
 0x121   :  { %2647 = vmatprep.subr.mxu0 %v466_v31  ;;  %v424_v31 = vadd.f32 %v3378_v11, %v3353_v0  ;;  %v457_v36 = vmax.f32 %v425_v27, 0.0 }
 0x122   :  { %2648 = vmatpush3.msra.mxu0 %v450_v33  ;;  %v408_v33 = vadd.f32 %v3378_v11, %v3321_v48  ;;  %v441_v38 = vmax.f32 %v409_v29, 0.0 }
 0x123   :  { %2649 = vmatprep.subr.mxu0 %v465_v35  ;;  %v423_v35 = vadd.f32 %v3347_v61, %v3378_v11  ;;  %v456_v40 = vmax.f32 %v424_v31, 0.0 }
 0x124   :  { %2650 = vmatpush3.msra.mxu0 %v449_v37  ;;  %v407_v37 = vadd.f32 %v3315_v45, %v3378_v11  ;;  %v440_v42 = vmax.f32 %v408_v33, 0.0 }
 0x125   :  { %2651 = vmatprep.subr.mxu0 %v464_v39  ;;  %v422_v39 = vadd.f32 %v3378_v11, %v3349_v62 }
 0x126   :  { %2652 = vmatpush3.msra.mxu0 %v448_v41  ;;  %v406_v41 = vadd.f32 %v3378_v11, %v3317_v46  ;;  %v439_v44 = vmax.f32 %v407_v37, 0.0  ;;  %v472_v11 = vld [vmem:[%s4017_s6 + $0x10] sm:$0xff] }
 0x127   :  { %2653 = vmatprep.subr.mxu0 %v463_v43  ;;  %v455_v43 = vmax.f32 %v423_v35, 0.0 }
 0x128   :  { %2654 = vmatpush3.msra.mxu0 %v447_v12  ;;  %v454_v12 = vmax.f32 %v422_v39, 0.0  ;;  %v438_v14 = vmax.f32 %v406_v41, 0.0 }
 0x129   :  { %2655 = vmatprep.subr.mxu0 %v462_v15  ;;  %v470_v15 = vld [vmem:[%s4017_s6] sm:$0xff] }
 0x12a   :  { %2656 = vmatpush3.msra.mxu0 %v446_v18  ;;  %v552_v18 = vld [vmem:[%s4014_s3 + $0x38] sm:$0xff] }
 0x12b   :  { %2657 = vmatprep.subr.mxu0 %v461_v20  ;;  %2862 = vmatprep.subr.mxu1 %v552_v18  ;;  %v550_v20 = vld [vmem:[%s4014_s3 + $0x18] sm:$0xff] }
 0x12c   :  { %2658 = vmatpush3.msra.mxu0 %v445_v22  ;;  %2863 = vmatpush3.msra.mxu1 %v552_v18 }
 0x12d   :  { %2659 = vmatprep.subr.mxu0 %v460_v24  ;;  %2864 = vmatprep.subr.mxu1 %v551_v19 }
 0x12e   :  { %2660 = vmatpush3.msra.mxu0 %v444_v26  ;;  %2865 = vmatpush3.msra.mxu1 %v551_v19 }
 0x12f   :  { %2661 = vmatprep.subr.mxu0 %v459_v28  ;;  %2866 = vmatprep.subr.mxu1 %v550_v20  ;;  %v2335_v28 = vld [vmem:[%s4016_s5 + $0x2] ss:$0 sm:$0xff] }
 0x130   :  { %2662 = vmatpush3.msra.mxu0 %v443_v30  ;;  %2867 = vmatpush3.msra.mxu1 %v550_v20 }
 0x131   :  { %2663 = vmatprep.subr.mxu0 %v458_v32  ;;  %2868 = vmatprep.subr.mxu1 %v549_v21 }
 0x132   :  { %2664 = vmatpush3.msra.mxu0 %v442_v34  ;;  %2869 = vmatpush3.msra.mxu1 %v549_v21 }
 0x133   :  { %2665 = vmatprep.subr.mxu0 %v457_v36 }
 0x134   :  { %2666 = vmatpush3.msra.mxu0 %v441_v38 }
 0x135   :  { %2667 = vmatprep.subr.mxu0 %v456_v40 }
 0x136   :  { %2668 = vmatpush3.msra.mxu0 %v440_v42 }
 0x137   :  { %2669 = vmatprep.subr.mxu0 %v455_v43 }
 0x138   :  { %2670 = vmatpush3.msra.mxu0 %v439_v44 }
 0x139   :  { %2671 = vmatprep.subr.mxu0 %v454_v12 }
 0x13a   :  { %2672 = vmatpush3.msra.mxu0 %v438_v14 }
 0x13b   :  { %539 = vmatmul.mubr.f32.vlgmr.msra.gmra.mxu0 %v470_v15 }
 0x13c   :  { %543 = vmatprep.mubr.f32.mxu0 %v473_v17 }
 0x13f   :  { %544 = vmatmul.mubr.f32.gmra.mxu0 %v472_v11 }
 0x1fb   :  { %v2673_v22 = vpop.f32.mrf.mxu0 }
 0x1fd   :  { %v2674_v23 = vpop.f32.mrf.mxu0 }
 0x1fe   :  { %v2675_v24 = vadd.f32 %v2674_v23, %v2673_v22 }
 0x1ff   :  { %v2676_v25 = vpop.f32.mrf.mxu0 }
 0x200   :  { %2870 = vmatprep.mubr.msk.f32.mxu1 %vm558_vm1, %v2675_v24 }
 0x201   :  { %v2677_v26 = vpop.f32.mrf.mxu0 }
 0x202   :  { %v2678_v27 = vadd.f32 %v2677_v26, %v2676_v25 }
 0x204   :  { %2871 = vmatmul.mubr.msk.f32.vlgmr.msra.gmra.mxu1 %vm558_vm1, %v2678_v27 }
 0x2c4   :  { %v2872_v29 = vpop.f32.mrf.mxu1 }
 0x2c5   :  { %v3474_v30 = vadd.f32 %v2872_v29, %v2335_v28 }
 0x2c6   :  { %v631_v31 = vpop.f32.mrf.mxu1 }
 0x2c7   :  { %v643_v32 = vand.u32 2147483647, %v3474_v30  ;;  %v3477_v33 = vadd.f32 %v2335_v28, %v631_v31  ;;  %v641_v21 = vmax.f32 %v3474_v30, 0.0 }
 0x2c9   :  { %v645_v34 = vsub.f32 0.0, %v643_v32  ;;  %v642_v35 = vand.u32 2147483647, %v3477_v33  ;;  %v640_v26 = vmax.f32 %v3477_v33, 0.0 }
 0x2cb   :  { %v648_v36 = vmul.f32 1.442695, %v645_v34  ;;  %v644_v37 = vsub.f32 0.0, %v642_v35 }
 0x2cd   :  { %3050 = vpow2.f32 %v648_v36  ;;  %v646_v38 = vmul.f32 1.442695, %v644_v37 }
 0x2cf   :  { %3052 = vpow2.f32 %v646_v38 }
 0x2da   :  { %v3051_v39 = vpop.eup %3050 }
 0x2db   :  { %v659_v40 = vadd.f32 1.0, %v3051_v39  ;;  %v662_v43 = vmul.f32 -0.5, %v3051_v39  ;;  %v665_v14 = vand.u32 2147483647, %v3051_v39 }
 0x2dc   :  { %v3053_v41 = vpop.eup %3052 }
 0x2dd   :  { %3054 = vlog2.f32 %v659_v40  ;;  %v650_v42 = vadd.f32 1.0, %v3053_v41  ;;  %v653_v44 = vmul.f32 -0.5, %v3053_v41  ;;  %v663_v12 = vadd.f32 1.0, %v662_v43  ;;  %v673_v43 = vld [vmem:[%s4012_s1 + $0x8] sm:$0xff] }
 0x2de   :  { %v656_v11 = vand.u32 2147483647, %v3053_v41  ;;  %vm666_vm2 = vcmp.lt.f32.partialorder %v665_v14, 0.0004427343  ;;  %v672_v14 = vld [vmem:[%s4012_s1] sm:$0xff]  ;;  %s3086_s1 = smov 14  }
 0x2df   :  { %3056 = vlog2.f32 %v650_v42  ;;  %v654_v15 = vadd.f32 1.0, %v653_v44  ;;  %v664_v19 = vmul.f32 %v3051_v39, %v663_v12 }
 0x2e0   :  { %vm657_vm3 = vcmp.lt.f32.partialorder %v656_v11, 0.0004427343 }
 0x2e1   :  { %v655_v24 = vmul.f32 %v3053_v41, %v654_v15 }
 0x2ea   :  { %v3055_v17 = vpop.eup %3054 }
 0x2eb   :  { %v661_v18 = vmul.f32 0.6931472, %v3055_v17  ;;  %v726_v17 = vld [vmem:[%s4018_s7] sm:$0xff] }
 0x2ec   :  { %v3057_v20 = vpop.eup %3056  ;;  %2877 = vmatprep.mubr.msk.f32.mxu1 %vm758_vm9, %v726_v17  ;;  %v740_v17 = vld [vmem:[%s4018_s7 + $0x70] sm:$0xff] }
 0x2ed   :  { %v667_v22 = vsel %vm666_vm2, %v664_v19, %v661_v18  ;;  %v652_v23 = vmul.f32 0.6931472, %v3057_v20 }
 0x2ee   :  { %v669_v25 = vadd.f32 %v667_v22, %v641_v21 }
 0x2ef   :  { %v658_v27 = vsel %vm657_vm3, %v655_v24, %v652_v23 }
 0x2f0   :  { %v3482_v28 = vadd.f32 1e-06, %v669_v25  ;;  %v668_v29 = vadd.f32 %v658_v27, %v640_v26 }
 0x2f2   :  { %v3484_v31 = vadd.f32 1e-06, %v668_v29  ;;  %3058 = vrsqrt.f32 %v3482_v28  ;;  %vm683_vm4 = vcmp.eq.f32.partialorder %v3482_v28, inf  ;;  %v686_v36 = vand.u32 2147483648, %v3482_v28 }
 0x2f3   :  { %vm685_vm5 = vcmp.eq.f32.partialorder %v3482_v28, 0.0 }
 0x2f4   :  { %3060 = vrsqrt.f32 %v3484_v31  ;;  %vm676_vm6 = vcmp.eq.f32.partialorder %v3484_v31, inf  ;;  %v679_v41 = vand.u32 2147483648, %v3484_v31  ;;  %vm678_vm7 = vcmp.eq.f32.partialorder %v3484_v31, 0.0 }
 0x2ff   :  { %v3059_v32 = vpop.eup %3058 }
 0x300   :  { %v682_v34 = vmul.f32 %v3059_v32, %v3482_v28 }
 0x301   :  { %v3061_v35 = vpop.eup %3060 }
 0x302   :  { %v684_v37 = vsel %vm683_vm4, %v3482_v28, %v682_v34  ;;  %v675_v38 = vmul.f32 %v3061_v35, %v3484_v31  ;;  %v727_v34 = vld [vmem:[%s4018_s7 + $0x8] sm:$0xff]  ;;  %v728_v35 = vld [vmem:[%s4018_s7 + $0x10] sm:$0xff] }
 0x303   :  { %v687_v39 = vsel %vm685_vm5, %v686_v36, %v684_v37  ;;  %v729_v36 = vld [vmem:[%s4018_s7 + $0x18] sm:$0xff]  ;;  %v730_v37 = vld [vmem:[%s4018_s7 + $0x20] sm:$0xff] }
 0x304   :  { %692 = vrot.lane.b32.xlu0 %v687_v39, %s3084_s15  ;;  %v677_v40 = vsel %vm676_vm6, %v3484_v31, %v675_v38  ;;  %v731_v38 = vld [vmem:[%s4018_s7 + $0x28] sm:$0xff]  ;;  %v732_v39 = vld [vmem:[%s4018_s7 + $0x30] sm:$0xff] }
 0x305   :  { %v680_v42 = vsel %vm678_vm7, %v679_v41, %v677_v40  ;;  %v733_v40 = vld [vmem:[%s4018_s7 + $0x38] sm:$0xff]  ;;  %v734_v41 = vld [vmem:[%s4018_s7 + $0x40] sm:$0xff] }
 0x308   :  { %690 = vrot.lane.b32.xlu0 %v680_v42, %s3084_s15  ;;  %v735_v42 = vld [vmem:[%s4018_s7 + $0x48] sm:$0xff] }
 0x376   :  { %v693_v44 = vpop.permute.xlu0 %692 }
 0x377   :  { %v697_v12 = vmul.f32 %v693_v44, %v673_v43  ;;  %v736_v43 = vld [vmem:[%s4018_s7 + $0x50] sm:$0xff]  ;;  %v737_v44 = vld [vmem:[%s4018_s7 + $0x58] sm:$0xff] }
 0x379   :  { %v3505_v15 = vadd.f32 %v697_v12, %v3474_v30  ;;  %v738_v12 = vld [vmem:[%s4018_s7 + $0x60] sm:$0xff] }
 0x37a   :  { %v691_v11 = vpop.permute.xlu0 %690 }
 0x37b   :  { %v696_v18 = vmul.f32 %v691_v11, %v672_v14  ;;  %v702_v19 = vsel %vm700_vm8, %v3505_v15, 1.0  ;;  %v739_v14 = vld [vmem:[%s4018_s7 + $0x68] sm:$0xff]  ;;  %v741_v11 = vld [vmem:[%s4018_s7 + $0x78] sm:$0xff] }
 0x37c   :  { %707 = vrot.lane.b32.xlu1 %v702_v19, %s3085_s21 }
 0x37d   :  { %v3514_v20 = vadd.f32 %v696_v18, %v3477_v33  ;;  %v742_v18 = vld [vmem:[%s4018_s7 + $0x80] sm:$0xff] }
 0x37f   :  { %v701_v21 = vsel %vm700_vm8, %v3514_v20, 1.0 }
 0x380   :  { %713 = vrot.lane.b32.xlu1 %v702_v19, %s3086_s1  ;;  %705 = vrot.lane.b32.xlu0 %v701_v21, %s3085_s21 }
 0x384   :  { %711 = vrot.lane.b32.xlu1 %v701_v21, %s3086_s1 }
 0x3ee   :  { %v708_v22 = vpop.permute.xlu1 %707 }
 0x3ef   :  { %v719_v23 = vsel %vm717_vm10, %v702_v19, %v708_v22  ;;  %v743_v19 = vld [vmem:[%s4018_s7 + $0x88] sm:$0xff]  ;;  %v745_v22 = vld [vmem:[%s4018_s7 + $0x98] sm:$0xff] }
 0x3f2   :  { %v714_v24 = vpop.permute.xlu1 %713  ;;  %v706_v26 = vpop.permute.xlu0 %705 }
 0x3f3   :  { %v722_v25 = vsel %vm720_vm11, %v719_v23, %v714_v24  ;;  %v718_v27 = vsel %vm717_vm10, %v701_v21, %v706_v26  ;;  %v744_v21 = vld [vmem:[%s4018_s7 + $0x90] sm:$0xff]  ;;  %v746_v23 = vld [vmem:[%s4018_s7 + $0xa0] sm:$0xff]  ;;  %v747_v24 = vld [vmem:[%s4018_s7 + $0xa8] sm:$0xff] }
 0x3f4   :  { %2873 = vmatprep.subr.msk.mxu1 %vm723_vm12, %v722_v25  ;;  %v749_v26 = vld [vmem:[%s4018_s7 + $0xb8] sm:$0xff] }
 0x3f5   :  { %2874 = vmatpush3.msk.msra.mxu1 %vm723_vm12, %v722_v25  ;;  %v748_v25 = vld [vmem:[%s4018_s7 + $0xb0] sm:$0xff] }
 0x3f6   :  { %v712_v29 = vpop.permute.xlu1 %711 }
 0x3f7   :  { %v721_v32 = vsel %vm720_vm11, %v718_v27, %v712_v29  ;;  %v750_v27 = vld [vmem:[%s4018_s7 + $0xc0] sm:$0xff]  ;;  %v751_v29 = vld [vmem:[%s4018_s7 + $0xc8] sm:$0xff] }
 0x3f8   :  { %2875 = vmatprep.subr.msk.mxu1 %vm723_vm12, %v721_v32 }
 0x3f9   :  { %2876 = vmatpush3.msk.msra.mxu1 %vm723_vm12, %v721_v32  ;;  %v752_v32 = vld [vmem:[%s4018_s7 + $0xd0] sm:$0xff] }
 0x3fa   :  { %2878 = vmatmul.mubr.msk.f32.vlgmr.msra.gmra.mxu1 %vm758_vm9, %v727_v34  ;;  %v753_v34 = vld [vmem:[%s4018_s7 + $0xd8] sm:$0xff] }
 0x3fb   :  { %2880 = vmatprep.mubr.msk.f32.mxu1 %vm758_vm9, %v728_v35  ;;  %v754_v35 = vld [vmem:[%s4018_s7 + $0xe0] sm:$0xff] }
 0x3fe   :  { %2881 = vmatmul.mubr.msk.f32.gmra.mxu1 %vm758_vm9, %v729_v36  ;;  %v755_v36 = vld [vmem:[%s4018_s7 + $0xe8] sm:$0xff] }
 0x3ff   :  { %2883 = vmatprep.mubr.msk.f32.mxu1 %vm758_vm9, %v730_v37  ;;  %v756_v37 = vld [vmem:[%s4018_s7 + $0xf0] sm:$0xff] }
 0x402   :  { %2884 = vmatmul.mubr.msk.f32.gmra.mxu1 %vm758_vm9, %v731_v38  ;;  %v757_v38 = vld [vmem:[%s4018_s7 + $0xf8] sm:$0xff] }
 0x403   :  { %2886 = vmatprep.mubr.msk.f32.mxu1 %vm758_vm9, %v732_v39  ;;  %v1146_v39 = vld [vmem:[%s4015_s4 + $0x10] sm:$0xff] }
 0x404   :  { %2925 = vmatprep.subr.mxu0 %v1146_v39  ;;  %3035 = vmatprep.subr.mxu1 %v1146_v39 }
 0x405   :  { %2926 = vmatpush3.msra.mxu0 %v1146_v39  ;;  %3038 = vmatpush3.msra.mxu1 %v1146_v39 }
 0x406   :  { %2887 = vmatmul.mubr.msk.f32.gmra.mxu1 %vm758_vm9, %v733_v40  ;;  %v1145_v40 = vld [vmem:[%s4015_s4 + $0x8] sm:$0xff] }
 0x407   :  { %2889 = vmatprep.mubr.msk.f32.mxu1 %vm758_vm9, %v734_v41  ;;  %2927 = vmatprep.subr.mxu0 %v1145_v40  ;;  %v1144_v41 = vld [vmem:[%s4015_s4] sm:$0xff] }
 0x408   :  { %3036 = vmatprep.subr.mxu1 %v1145_v40  ;;  %2928 = vmatpush3.msra.mxu0 %v1145_v40 }
 0x409   :  { %3039 = vmatpush3.msra.mxu1 %v1145_v40  ;;  %2929 = vmatprep.subr.mxu0 %v1144_v41  ;;  %v1089_v40 = vld [vmem:[%s4019_s8 + $0x48] sm:$0xff] }
 0x40a   :  { %2890 = vmatmul.mubr.msk.f32.gmra.mxu1 %vm758_vm9, %v735_v42  ;;  %3037 = vmatprep.subr.mxu1 %v1144_v41 }
 0x40b   :  { %2892 = vmatprep.mubr.msk.f32.mxu1 %vm758_vm9, %v736_v43  ;;  %2930 = vmatpush3.msra.mxu0 %v1144_v41  ;;  %v1080_v43 = vld [vmem:[%s4019_s8] sm:$0xff] }
 0x40c   :  { %3040 = vmatpush3.msra.mxu1 %v1144_v41 }
 0x40e   :  { %2893 = vmatmul.mubr.msk.f32.gmra.mxu1 %vm758_vm9, %v737_v44  ;;  %v1081_v44 = vld [vmem:[%s4019_s8 + $0x8] sm:$0xff] }
 0x40f   :  { %2895 = vmatprep.mubr.msk.f32.mxu1 %vm758_vm9, %v738_v12 }
 0x412   :  { %2896 = vmatmul.mubr.msk.f32.gmra.mxu1 %vm758_vm9, %v739_v14 }
 0x413   :  { %2898 = vmatprep.mubr.msk.f32.mxu1 %vm758_vm9, %v740_v17  ;;  %v1083_v17 = vld [vmem:[%s4019_s8 + $0x18] sm:$0xff] }
 0x416   :  { %2899 = vmatmul.mubr.msk.f32.gmra.mxu1 %vm758_vm9, %v741_v11 }
 0x417   :  { %2901 = vmatprep.mubr.msk.f32.mxu1 %vm758_vm9, %v742_v18 }
 0x41a   :  { %2902 = vmatmul.mubr.msk.f32.gmra.mxu1 %vm758_vm9, %v743_v19  ;;  %v1082_v19 = vld [vmem:[%s4019_s8 + $0x10] sm:$0xff] }
 0x41b   :  { %2904 = vmatprep.mubr.msk.f32.mxu1 %vm758_vm9, %v744_v21 }
 0x41e   :  { %2905 = vmatmul.mubr.msk.f32.gmra.mxu1 %vm758_vm9, %v745_v22 }
 0x41f   :  { %2907 = vmatprep.mubr.msk.f32.mxu1 %vm758_vm9, %v746_v23 }
 0x422   :  { %2908 = vmatmul.mubr.msk.f32.gmra.mxu1 %vm758_vm9, %v747_v24  ;;  %v1085_v24 = vld [vmem:[%s4019_s8 + $0x28] sm:$0xff] }
 0x423   :  { %2910 = vmatprep.mubr.msk.f32.mxu1 %vm758_vm9, %v748_v25 }
 0x426   :  { %2911 = vmatmul.mubr.msk.f32.gmra.mxu1 %vm758_vm9, %v749_v26  ;;  %v1084_v26 = vld [vmem:[%s4019_s8 + $0x20] sm:$0xff] }
 0x427   :  { %2913 = vmatprep.mubr.msk.f32.mxu1 %vm758_vm9, %v750_v27 }
 0x42a   :  { %2914 = vmatmul.mubr.msk.f32.gmra.mxu1 %vm758_vm9, %v751_v29 }
 0x42b   :  { %2916 = vmatprep.mubr.msk.f32.mxu1 %vm758_vm9, %v752_v32 }
 0x42e   :  { %2917 = vmatmul.mubr.msk.f32.gmra.mxu1 %vm758_vm9, %v753_v34  ;;  %v1087_v34 = vld [vmem:[%s4019_s8 + $0x38] sm:$0xff] }
 0x42f   :  { %2919 = vmatprep.mubr.msk.f32.mxu1 %vm758_vm9, %v754_v35 }
 0x432   :  { %2920 = vmatmul.mubr.msk.f32.gmra.mxu1 %vm758_vm9, %v755_v36  ;;  %v1086_v36 = vld [vmem:[%s4019_s8 + $0x30] sm:$0xff] }
 0x433   :  { %2922 = vmatprep.mubr.msk.f32.mxu1 %vm758_vm9, %v756_v37 }
 0x436   :  { %2923 = vmatmul.mubr.msk.f32.gmra.mxu1 %vm758_vm9, %v757_v38 }
 0x4ba   :  { %v2879_v42 = vpop.f32.mrf.mxu1 }
 0x4bb   :  { %v1113_v11 = vmul.f32 %v2879_v42, %v1081_v44  ;;  %v1088_v42 = vld [vmem:[%s4019_s8 + $0x40] sm:$0xff] }
 0x4bc   :  { %v921_v12 = vpop.f32.mrf.mxu1 }
 0x4bd   :  { %v1112_v14 = vmul.f32 %v1080_v43, %v921_v12 }
 0x4be   :  { %v2882_v18 = vpop.f32.mrf.mxu1 }
 0x4bf   :  { %2931 = vmatprep.mubr.msk.f32.mxu0 %vm1147_vm13, %v1112_v14  ;;  %v1115_v21 = vmul.f32 %v2882_v18, %v1083_v17  ;;  %v1091_v14 = vld [vmem:[%s4019_s8 + $0x58] sm:$0xff] }
 0x4c0   :  { %v931_v22 = vpop.f32.mrf.mxu1  ;;  %2932 = vmatmul.mubr.msk.f32.vlgmr.msra.gmra.mxu0 %vm1147_vm13, %v1113_v11  ;;  %v1090_v11 = vld [vmem:[%s4019_s8 + $0x50] sm:$0xff] }
 0x4c1   :  { %v1114_v23 = vmul.f32 %v1082_v19, %v931_v22  ;;  %v1093_v22 = vld [vmem:[%s4019_s8 + $0x68] sm:$0xff] }
 0x4c2   :  { %v2885_v25 = vpop.f32.mrf.mxu1 }
 0x4c3   :  { %2934 = vmatprep.mubr.msk.f32.mxu0 %vm1147_vm13, %v1114_v23  ;;  %v1117_v27 = vmul.f32 %v2885_v25, %v1085_v24  ;;  %v1092_v24 = vld [vmem:[%s4019_s8 + $0x60] sm:$0xff] }
 0x4c4   :  { %v941_v29 = vpop.f32.mrf.mxu1  ;;  %2935 = vmatmul.mubr.msk.f32.gmra.mxu0 %vm1147_vm13, %v1115_v21 }
 0x4c5   :  { %v1116_v32 = vmul.f32 %v1084_v26, %v941_v29  ;;  %v1095_v29 = vld [vmem:[%s4019_s8 + $0x78] sm:$0xff] }
 0x4c6   :  { %v2888_v35 = vpop.f32.mrf.mxu1 }
 0x4c7   :  { %2937 = vmatprep.mubr.msk.f32.mxu0 %vm1147_vm13, %v1116_v32  ;;  %v1119_v37 = vmul.f32 %v2888_v35, %v1087_v34  ;;  %v1094_v34 = vld [vmem:[%s4019_s8 + $0x70] sm:$0xff] }
 0x4c8   :  { %v951_v38 = vpop.f32.mrf.mxu1  ;;  %2938 = vmatmul.mubr.msk.f32.gmra.mxu0 %vm1147_vm13, %v1117_v27 }
 0x4c9   :  { %v1118_v39 = vmul.f32 %v1086_v36, %v951_v38  ;;  %v1097_v38 = vld [vmem:[%s4019_s8 + $0x88] sm:$0xff] }
 0x4ca   :  { %v2891_v41 = vpop.f32.mrf.mxu1 }
 0x4cb   :  { %2940 = vmatprep.mubr.msk.f32.mxu0 %vm1147_vm13, %v1118_v39  ;;  %v1121_v43 = vmul.f32 %v2891_v41, %v1089_v40  ;;  %v1096_v40 = vld [vmem:[%s4019_s8 + $0x80] sm:$0xff] }
 0x4cc   :  { %v961_v44 = vpop.f32.mrf.mxu1  ;;  %2941 = vmatmul.mubr.msk.f32.gmra.mxu0 %vm1147_vm13, %v1119_v37 }
 0x4cd   :  { %v1120_v12 = vmul.f32 %v1088_v42, %v961_v44  ;;  %v1099_v44 = vld [vmem:[%s4019_s8 + $0x98] sm:$0xff] }
 0x4ce   :  { %v2894_v17 = vpop.f32.mrf.mxu1 }
 0x4cf   :  { %2943 = vmatprep.mubr.msk.f32.mxu0 %vm1147_vm13, %v1120_v12  ;;  %v1123_v18 = vmul.f32 %v2894_v17, %v1091_v14  ;;  %v1098_v14 = vld [vmem:[%s4019_s8 + $0x90] sm:$0xff] }
 0x4d0   :  { %v971_v19 = vpop.f32.mrf.mxu1  ;;  %2944 = vmatmul.mubr.msk.f32.gmra.mxu0 %vm1147_vm13, %v1121_v43 }
 0x4d1   :  { %v1122_v21 = vmul.f32 %v1090_v11, %v971_v19  ;;  %v1101_v19 = vld [vmem:[%s4019_s8 + $0xa8] sm:$0xff] }
 0x4d2   :  { %v2897_v23 = vpop.f32.mrf.mxu1 }
 0x4d3   :  { %2946 = vmatprep.mubr.msk.f32.mxu0 %vm1147_vm13, %v1122_v21  ;;  %v1125_v25 = vmul.f32 %v2897_v23, %v1093_v22  ;;  %v1100_v22 = vld [vmem:[%s4019_s8 + $0xa0] sm:$0xff] }
 0x4d4   :  { %v981_v26 = vpop.f32.mrf.mxu1  ;;  %2947 = vmatmul.mubr.msk.f32.gmra.mxu0 %vm1147_vm13, %v1123_v18 }
 0x4d5   :  { %v1124_v27 = vmul.f32 %v1092_v24, %v981_v26  ;;  %v1103_v26 = vld [vmem:[%s4019_s8 + $0xb8] sm:$0xff] }
 0x4d6   :  { %v2900_v32 = vpop.f32.mrf.mxu1 }
 0x4d7   :  { %2949 = vmatprep.mubr.msk.f32.mxu0 %vm1147_vm13, %v1124_v27  ;;  %v1127_v35 = vmul.f32 %v2900_v32, %v1095_v29  ;;  %v1102_v29 = vld [vmem:[%s4019_s8 + $0xb0] sm:$0xff] }
 0x4d8   :  { %v991_v36 = vpop.f32.mrf.mxu1  ;;  %2950 = vmatmul.mubr.msk.f32.gmra.mxu0 %vm1147_vm13, %v1125_v25 }
 0x4d9   :  { %v1126_v37 = vmul.f32 %v1094_v34, %v991_v36  ;;  %v1105_v36 = vld [vmem:[%s4019_s8 + $0xc8] sm:$0xff] }
 0x4da   :  { %v2903_v39 = vpop.f32.mrf.mxu1 }
 0x4db   :  { %2952 = vmatprep.mubr.msk.f32.mxu0 %vm1147_vm13, %v1126_v37  ;;  %v1129_v41 = vmul.f32 %v2903_v39, %v1097_v38  ;;  %v1104_v38 = vld [vmem:[%s4019_s8 + $0xc0] sm:$0xff] }
 0x4dc   :  { %v1001_v42 = vpop.f32.mrf.mxu1  ;;  %2953 = vmatmul.mubr.msk.f32.gmra.mxu0 %vm1147_vm13, %v1127_v35 }
 0x4dd   :  { %v1128_v43 = vmul.f32 %v1096_v40, %v1001_v42  ;;  %v1107_v42 = vld [vmem:[%s4019_s8 + $0xd8] sm:$0xff] }
 0x4de   :  { %v2906_v12 = vpop.f32.mrf.mxu1 }
 0x4df   :  { %2955 = vmatprep.mubr.msk.f32.mxu0 %vm1147_vm13, %v1128_v43  ;;  %v1131_v17 = vmul.f32 %v2906_v12, %v1099_v44  ;;  %v1106_v44 = vld [vmem:[%s4019_s8 + $0xd0] sm:$0xff] }
 0x4e0   :  { %v1011_v11 = vpop.f32.mrf.mxu1  ;;  %2956 = vmatmul.mubr.msk.f32.gmra.mxu0 %vm1147_vm13, %v1129_v41 }
 0x4e1   :  { %v1130_v18 = vmul.f32 %v1098_v14, %v1011_v11  ;;  %v1109_v11 = vld [vmem:[%s4019_s8 + $0xe8] sm:$0xff] }
 0x4e2   :  { %v2909_v21 = vpop.f32.mrf.mxu1 }
 0x4e3   :  { %2958 = vmatprep.mubr.msk.f32.mxu0 %vm1147_vm13, %v1130_v18  ;;  %v1133_v23 = vmul.f32 %v2909_v21, %v1101_v19  ;;  %v1108_v19 = vld [vmem:[%s4019_s8 + $0xe0] sm:$0xff] }
 0x4e4   :  { %v1021_v24 = vpop.f32.mrf.mxu1  ;;  %2959 = vmatmul.mubr.msk.f32.gmra.mxu0 %vm1147_vm13, %v1131_v17 }
 0x4e5   :  { %v1132_v25 = vmul.f32 %v1100_v22, %v1021_v24  ;;  %v1111_v24 = vld [vmem:[%s4019_s8 + $0xf8] sm:$0xff] }
 0x4e6   :  { %v2912_v27 = vpop.f32.mrf.mxu1 }
 0x4e7   :  { %2961 = vmatprep.mubr.msk.f32.mxu0 %vm1147_vm13, %v1132_v25  ;;  %v1135_v32 = vmul.f32 %v2912_v27, %v1103_v26  ;;  %v1110_v26 = vld [vmem:[%s4019_s8 + $0xf0] sm:$0xff] }
 0x4e8   :  { %v1031_v34 = vpop.f32.mrf.mxu1  ;;  %2962 = vmatmul.mubr.msk.f32.gmra.mxu0 %vm1147_vm13, %v1133_v23 }
 0x4e9   :  { %v1134_v35 = vmul.f32 %v1102_v29, %v1031_v34 }
 0x4ea   :  { %v2915_v37 = vpop.f32.mrf.mxu1 }
 0x4eb   :  { %2964 = vmatprep.mubr.msk.f32.mxu0 %vm1147_vm13, %v1134_v35  ;;  %v1137_v39 = vmul.f32 %v2915_v37, %v1105_v36  ;;  %v2404_v37 = vld [vmem:[%s4016_s5 + $0x1] ss:$0 sm:$0xff] }
 0x4ec   :  { %v1041_v40 = vpop.f32.mrf.mxu1  ;;  %2965 = vmatmul.mubr.msk.f32.gmra.mxu0 %vm1147_vm13, %v1135_v32 }
 0x4ed   :  { %v1136_v41 = vmul.f32 %v1104_v38, %v1041_v40 }
 0x4ee   :  { %v2918_v43 = vpop.f32.mrf.mxu1 }
 0x4ef   :  { %2967 = vmatprep.mubr.msk.f32.mxu0 %vm1147_vm13, %v1136_v41  ;;  %v1139_v12 = vmul.f32 %v2918_v43, %v1107_v42 }
 0x4f0   :  { %v1051_v14 = vpop.f32.mrf.mxu1  ;;  %2968 = vmatmul.mubr.msk.f32.gmra.mxu0 %vm1147_vm13, %v1137_v39 }
 0x4f1   :  { %v1138_v17 = vmul.f32 %v1106_v44, %v1051_v14 }
 0x4f2   :  { %v2921_v18 = vpop.f32.mrf.mxu1 }
 0x4f3   :  { %2970 = vmatprep.mubr.msk.f32.mxu0 %vm1147_vm13, %v1138_v17  ;;  %v1141_v21 = vmul.f32 %v2921_v18, %v1109_v11 }
 0x4f4   :  { %v1061_v22 = vpop.f32.mrf.mxu1  ;;  %2971 = vmatmul.mubr.msk.f32.gmra.mxu0 %vm1147_vm13, %v1139_v12 }
 0x4f5   :  { %v1140_v23 = vmul.f32 %v1108_v19, %v1061_v22 }
 0x4f6   :  { %v2924_v25 = vpop.f32.mrf.mxu1 }
 0x4f7   :  { %2973 = vmatprep.mubr.msk.f32.mxu1 %vm1147_vm13, %v1140_v23  ;;  %v1143_v27 = vmul.f32 %v2924_v25, %v1111_v24 }
 0x4f8   :  { %v1071_v29 = vpop.f32.mrf.mxu1  ;;  %2974 = vmatmul.mubr.msk.f32.vlgmr.msra.gmra.mxu1 %vm1147_vm13, %v1141_v21 }
 0x4f9   :  { %v1142_v32 = vmul.f32 %v1110_v26, %v1071_v29 }
 0x4fb   :  { %2976 = vmatprep.mubr.msk.f32.mxu1 %vm1147_vm13, %v1142_v32 }
 0x4fc   :  { %2977 = vmatmul.mubr.msk.f32.gmra.mxu1 %vm1147_vm13, %v1143_v27 }
 0x580   :  { %v2933_v34 = vpop.f32.mrf.mxu0 }
 0x581   :  { %1503 = vrot.lane.b32.xlu1 %v2933_v34, %s3087_s27 }
 0x582   :  { %v1310_v35 = vpop.f32.mrf.mxu0 }
 0x583   :  { %1501 = vrot.lane.b32.xlu0 %v1310_v35, %s3087_s27 }
 0x584   :  { %v2936_v36 = vpop.f32.mrf.mxu0 }
 0x586   :  { %v1320_v38 = vpop.f32.mrf.mxu0 }
 0x587   :  { %1635 = vrot.lane.b32.xlu0 %v2404_v37, %s3087_s27  ;;  %1505 = vrot.lane.b32.xlu1 %v1320_v38, %s3087_s27 }
 0x588   :  { %v2939_v39 = vpop.f32.mrf.mxu0 }
 0x58a   :  { %v1330_v40 = vpop.f32.mrf.mxu0 }
 0x58b   :  { %1507 = vrot.lane.b32.xlu0 %v2936_v36, %s3087_s27  ;;  %1509 = vrot.lane.b32.xlu1 %v1330_v40, %s3087_s27 }
 0x58c   :  { %v2942_v41 = vpop.f32.mrf.mxu0 }
 0x58e   :  { %v1340_v42 = vpop.f32.mrf.mxu0 }
 0x58f   :  { %1511 = vrot.lane.b32.xlu0 %v2939_v39, %s3087_s27  ;;  %1513 = vrot.lane.b32.xlu1 %v1340_v42, %s3087_s27  ;;  %v1704_v42 = vld [vmem:[%s4014_s3 + $0x20] sm:$0xff] }
 0x590   :  { %v2945_v43 = vpop.f32.mrf.mxu0 }
 0x592   :  { %v1350_v44 = vpop.f32.mrf.mxu0 }
 0x593   :  { %1515 = vrot.lane.b32.xlu0 %v2942_v41, %s3087_s27  ;;  %1517 = vrot.lane.b32.xlu1 %v1350_v44, %s3087_s27  ;;  %v1705_v41 = vld [vmem:[%s4014_s3 + $0x30] sm:$0xff]  ;;  %v1702_v44 = vld [vmem:[%s4014_s3] sm:$0xff] }
 0x594   :  { %v2948_v12 = vpop.f32.mrf.mxu0  ;;  %2979 = vmatprep.subr.mxu1 %v1705_v41 }
 0x595   :  { %2980 = vmatpush3.msra.mxu1 %v1705_v41 }
 0x596   :  { %v1360_v14 = vpop.f32.mrf.mxu0  ;;  %2981 = vmatprep.subr.mxu1 %v1704_v42 }
 0x597   :  { %1519 = vrot.lane.b32.xlu0 %v2945_v43, %s3087_s27  ;;  %1521 = vrot.lane.b32.xlu1 %v1360_v14, %s3087_s27  ;;  %v1703_v43 = vld [vmem:[%s4014_s3 + $0x10] sm:$0xff]  ;;  %s3088_s3 = smov 96  }
 0x598   :  { %v2951_v17 = vpop.f32.mrf.mxu0  ;;  %2982 = vmatpush3.msra.mxu1 %v1704_v42 }
 0x599   :  { %2983 = vmatprep.subr.mxu1 %v1703_v43 }
 0x59a   :  { %v1370_v11 = vpop.f32.mrf.mxu0  ;;  %2984 = vmatpush3.msra.mxu1 %v1703_v43 }
 0x59b   :  { %1523 = vrot.lane.b32.xlu0 %v2948_v12, %s3087_s27  ;;  %1525 = vrot.lane.b32.xlu1 %v1370_v11, %s3087_s27 }
 0x59c   :  { %v2954_v18 = vpop.f32.mrf.mxu0  ;;  %2985 = vmatprep.subr.mxu1 %v1702_v44 }
 0x59d   :  { %2986 = vmatpush3.msra.mxu1 %v1702_v44 }
 0x59e   :  { %v1380_v19 = vpop.f32.mrf.mxu0 }
 0x59f   :  { %1527 = vrot.lane.b32.xlu0 %v2951_v17, %s3087_s27  ;;  %1529 = vrot.lane.b32.xlu1 %v1380_v19, %s3087_s27 }
 0x5a0   :  { %v2957_v21 = vpop.f32.mrf.mxu0 }
 0x5a2   :  { %v1390_v22 = vpop.f32.mrf.mxu0 }
 0x5a3   :  { %1531 = vrot.lane.b32.xlu0 %v2954_v18, %s3087_s27  ;;  %1533 = vrot.lane.b32.xlu1 %v1390_v22, %s3087_s27 }
 0x5a4   :  { %v2960_v23 = vpop.f32.mrf.mxu0 }
 0x5a6   :  { %v1400_v24 = vpop.f32.mrf.mxu0 }
 0x5a7   :  { %1535 = vrot.lane.b32.xlu0 %v2957_v21, %s3087_s27  ;;  %1537 = vrot.lane.b32.xlu1 %v1400_v24, %s3087_s27 }
 0x5a8   :  { %v2963_v25 = vpop.f32.mrf.mxu0 }
 0x5aa   :  { %v1410_v26 = vpop.f32.mrf.mxu0 }
 0x5ab   :  { %1539 = vrot.lane.b32.xlu0 %v2960_v23, %s3087_s27  ;;  %1541 = vrot.lane.b32.xlu1 %v1410_v26, %s3087_s27 }
 0x5ac   :  { %v2966_v27 = vpop.f32.mrf.mxu0 }
 0x5ae   :  { %v1420_v29 = vpop.f32.mrf.mxu0 }
 0x5af   :  { %1543 = vrot.lane.b32.xlu0 %v2963_v25, %s3087_s27  ;;  %1545 = vrot.lane.b32.xlu1 %v1420_v29, %s3087_s27 }
 0x5b0   :  { %v2969_v32 = vpop.f32.mrf.mxu0 }
 0x5b2   :  { %v1430_v34 = vpop.f32.mrf.mxu0 }
 0x5b3   :  { %1547 = vrot.lane.b32.xlu0 %v2966_v27, %s3087_s27  ;;  %1549 = vrot.lane.b32.xlu1 %v1430_v34, %s3087_s27 }
 0x5b4   :  { %v2972_v35 = vpop.f32.mrf.mxu0 }
 0x5b6   :  { %v1440_v36 = vpop.f32.mrf.mxu0 }
 0x5b7   :  { %1551 = vrot.lane.b32.xlu0 %v2969_v32, %s3087_s27  ;;  %1553 = vrot.lane.b32.xlu1 %v1440_v36, %s3087_s27 }
 0x5b8   :  { %v2975_v37 = vpop.f32.mrf.mxu1 }
 0x5ba   :  { %v1450_v38 = vpop.f32.mrf.mxu1 }
 0x5bb   :  { %1555 = vrot.lane.b32.xlu0 %v2972_v35, %s3087_s27  ;;  %1557 = vrot.lane.b32.xlu1 %v1450_v38, %s3087_s27 }
 0x5bc   :  { %v2978_v39 = vpop.f32.mrf.mxu1 }
 0x5be   :  { %v1460_v40 = vpop.f32.mrf.mxu1 }
 0x5bf   :  { %1559 = vrot.lane.b32.xlu0 %v2975_v37, %s3087_s27  ;;  %1561 = vrot.lane.b32.xlu1 %v1460_v40, %s3087_s27 }
 0x5c3   :  { %1563 = vrot.lane.b32.xlu0 %v2978_v39, %s3087_s27 }
 0x5f3   :  { %v1504_v12 = vpop.permute.xlu1 %1503 }
 0x5f4   :  { %v1598_v17 = vadd.f32 %v3315_v45, %v1504_v12 }
 0x5f5   :  { %v1502_v14 = vpop.permute.xlu0 %1501 }
 0x5f6   :  { %v1597_v11 = vadd.f32 %v1502_v14, %v3317_v46 }
 0x5f9   :  { %v3829_v18 = vpop.permute.xlu0 %1635  ;;  %v1506_v19 = vpop.permute.xlu1 %1505 }
 0x5fa   :  { %v1599_v21 = vadd.f32 %v1506_v19, %v3321_v48  ;;  %v1639_v22 = vadd.f32 %v3829_v18, %v1598_v17  ;;  %v1638_v23 = vadd.f32 %v3829_v18, %v1597_v11 }
 0x5fc   :  { %v1640_v24 = vadd.f32 %v3829_v18, %v1599_v21  ;;  %v1671_v25 = vmax.f32 %v1639_v22, 0.0  ;;  %v1670_v26 = vmax.f32 %v1638_v23, 0.0 }
 0x5fd   :  { %v1508_v27 = vpop.permute.xlu0 %1507  ;;  %v1510_v29 = vpop.permute.xlu1 %1509 }
 0x5fe   :  { %v1600_v32 = vadd.f32 %v3319_v47, %v1508_v27  ;;  %v1601_v45 = vadd.f32 %v1510_v29, %v3325_v50  ;;  %1745 = vrot.lane.b32.xlu0 %v1671_v25, %s3088_s3  ;;  %1743 = vrot.lane.b32.xlu1 %v1670_v26, %s3088_s3  ;;  %v1672_v46 = vmax.f32 %v1640_v24, 0.0 }
 0x600   :  { %v1641_v48 = vadd.f32 %v3829_v18, %v1600_v32  ;;  %v1642_v34 = vadd.f32 %v3829_v18, %v1601_v45 }
 0x601   :  { %v1512_v35 = vpop.permute.xlu0 %1511  ;;  %v1514_v36 = vpop.permute.xlu1 %1513 }
 0x602   :  { %v1673_v37 = vmax.f32 %v1641_v48, 0.0  ;;  %v1602_v38 = vadd.f32 %v3323_v49, %v1512_v35  ;;  %v1603_v39 = vadd.f32 %v1514_v36, %v3329_v52  ;;  %1747 = vrot.lane.b32.xlu1 %v1672_v46, %s3088_s3  ;;  %v1674_v47 = vmax.f32 %v1642_v34, 0.0 }
 0x604   :  { %v1643_v50 = vadd.f32 %v3829_v18, %v1602_v38  ;;  %v1644_v40 = vadd.f32 %v3829_v18, %v1603_v39  ;;  %1749 = vrot.lane.b32.xlu0 %v1673_v37, %s3088_s3 }
 0x605   :  { %v1516_v41 = vpop.permute.xlu0 %1515  ;;  %v1518_v42 = vpop.permute.xlu1 %1517 }
 0x606   :  { %v1675_v43 = vmax.f32 %v1643_v50, 0.0  ;;  %v1604_v44 = vadd.f32 %v3327_v51, %v1516_v41  ;;  %v1605_v12 = vadd.f32 %v1518_v42, %v3333_v54  ;;  %1751 = vrot.lane.b32.xlu1 %v1674_v47, %s3088_s3  ;;  %v1676_v49 = vmax.f32 %v1644_v40, 0.0 }
 0x608   :  { %v1645_v52 = vadd.f32 %v3829_v18, %v1604_v44  ;;  %v1646_v14 = vadd.f32 %v3829_v18, %v1605_v12  ;;  %1753 = vrot.lane.b32.xlu0 %v1675_v43, %s3088_s3 }
 0x609   :  { %v1520_v17 = vpop.permute.xlu0 %1519  ;;  %v1522_v11 = vpop.permute.xlu1 %1521 }
 0x60a   :  { %v1677_v19 = vmax.f32 %v1645_v52, 0.0  ;;  %v1606_v21 = vadd.f32 %v3331_v53, %v1520_v17  ;;  %v1607_v22 = vadd.f32 %v1522_v11, %v3337_v56  ;;  %1755 = vrot.lane.b32.xlu1 %v1676_v49, %s3088_s3  ;;  %v1678_v51 = vmax.f32 %v1646_v14, 0.0 }
 0x60c   :  { %v1647_v54 = vadd.f32 %v3829_v18, %v1606_v21  ;;  %v1648_v23 = vadd.f32 %v3829_v18, %v1607_v22  ;;  %1757 = vrot.lane.b32.xlu0 %v1677_v19, %s3088_s3 }
 0x60d   :  { %v1524_v24 = vpop.permute.xlu0 %1523  ;;  %v1526_v25 = vpop.permute.xlu1 %1525 }
 0x60e   :  { %v1679_v26 = vmax.f32 %v1647_v54, 0.0  ;;  %v1608_v27 = vadd.f32 %v3335_v55, %v1524_v24  ;;  %v1609_v29 = vadd.f32 %v1526_v25, %v3341_v58  ;;  %1759 = vrot.lane.b32.xlu1 %v1678_v51, %s3088_s3  ;;  %v1680_v53 = vmax.f32 %v1648_v23, 0.0 }
 0x610   :  { %v1649_v56 = vadd.f32 %v3829_v18, %v1608_v27  ;;  %v1650_v32 = vadd.f32 %v3829_v18, %v1609_v29  ;;  %1761 = vrot.lane.b32.xlu0 %v1679_v26, %s3088_s3 }
 0x611   :  { %v1528_v45 = vpop.permute.xlu0 %1527  ;;  %v1530_v46 = vpop.permute.xlu1 %1529 }
 0x612   :  { %v1681_v48 = vmax.f32 %v1649_v56, 0.0  ;;  %v1610_v34 = vadd.f32 %v3339_v57, %v1528_v45  ;;  %v1611_v35 = vadd.f32 %v1530_v46, %v3345_v60  ;;  %1763 = vrot.lane.b32.xlu1 %v1680_v53, %s3088_s3  ;;  %v1682_v55 = vmax.f32 %v1650_v32, 0.0 }
 0x614   :  { %v1651_v58 = vadd.f32 %v3829_v18, %v1610_v34  ;;  %v1652_v36 = vadd.f32 %v3829_v18, %v1611_v35  ;;  %1765 = vrot.lane.b32.xlu0 %v1681_v48, %s3088_s3 }
 0x615   :  { %v1532_v37 = vpop.permute.xlu0 %1531  ;;  %v1534_v38 = vpop.permute.xlu1 %1533 }
 0x616   :  { %v1683_v39 = vmax.f32 %v1651_v58, 0.0  ;;  %v1612_v47 = vadd.f32 %v3343_v59, %v1532_v37  ;;  %v1613_v50 = vadd.f32 %v1534_v38, %v3349_v62  ;;  %1767 = vrot.lane.b32.xlu1 %v1682_v55, %s3088_s3  ;;  %v1684_v57 = vmax.f32 %v1652_v36, 0.0 }
 0x618   :  { %v1653_v60 = vadd.f32 %v3829_v18, %v1612_v47  ;;  %v1654_v40 = vadd.f32 %v3829_v18, %v1613_v50  ;;  %1769 = vrot.lane.b32.xlu0 %v1683_v39, %s3088_s3 }
 0x619   :  { %v1536_v41 = vpop.permute.xlu0 %1535  ;;  %v1538_v42 = vpop.permute.xlu1 %1537 }
 0x61a   :  { %v1685_v43 = vmax.f32 %v1653_v60, 0.0  ;;  %v1614_v44 = vadd.f32 %v3347_v61, %v1536_v41  ;;  %v1615_v12 = vadd.f32 %v1538_v42, %v3353_v0  ;;  %1771 = vrot.lane.b32.xlu1 %v1684_v57, %s3088_s3  ;;  %v1686_v59 = vmax.f32 %v1654_v40, 0.0 }
 0x61c   :  { %v1655_v62 = vadd.f32 %v3829_v18, %v1614_v44  ;;  %v1656_v49 = vadd.f32 %v3829_v18, %v1615_v12  ;;  %1773 = vrot.lane.b32.xlu0 %v1685_v43, %s3088_s3 }
 0x61d   :  { %v1540_v52 = vpop.permute.xlu0 %1539  ;;  %v1542_v14 = vpop.permute.xlu1 %1541 }
 0x61e   :  { %v1687_v17 = vmax.f32 %v1655_v62, 0.0  ;;  %v1616_v11 = vadd.f32 %v3351_v63, %v1540_v52  ;;  %v1617_v19 = vadd.f32 %v1542_v14, %v3357_v2  ;;  %1775 = vrot.lane.b32.xlu1 %v1686_v59, %s3088_s3  ;;  %v1688_v61 = vmax.f32 %v1656_v49, 0.0 }
 0x620   :  { %v1657_v0 = vadd.f32 %v3829_v18, %v1616_v11  ;;  %v1658_v21 = vadd.f32 %v3829_v18, %v1617_v19  ;;  %1777 = vrot.lane.b32.xlu0 %v1687_v17, %s3088_s3 }
 0x621   :  { %v1544_v22 = vpop.permute.xlu0 %1543  ;;  %v1546_v51 = vpop.permute.xlu1 %1545 }
 0x622   :  { %v1689_v54 = vmax.f32 %v1657_v0, 0.0  ;;  %v1618_v23 = vadd.f32 %v3355_v1, %v1544_v22  ;;  %v1619_v24 = vadd.f32 %v1546_v51, %v3361_v4  ;;  %1779 = vrot.lane.b32.xlu1 %v1688_v61, %s3088_s3  ;;  %v1690_v63 = vmax.f32 %v1658_v21, 0.0 }
 0x624   :  { %v1659_v2 = vadd.f32 %v3829_v18, %v1618_v23  ;;  %v1660_v25 = vadd.f32 %v3829_v18, %v1619_v24  ;;  %1781 = vrot.lane.b32.xlu0 %v1689_v54, %s3088_s3 }
 0x625   :  { %v1548_v26 = vpop.permute.xlu0 %1547  ;;  %v1550_v27 = vpop.permute.xlu1 %1549 }
 0x626   :  { %v1691_v29 = vmax.f32 %v1659_v2, 0.0  ;;  %v1620_v53 = vadd.f32 %v3359_v3, %v1548_v26  ;;  %v1621_v56 = vadd.f32 %v1550_v27, %v3365_v6  ;;  %1783 = vrot.lane.b32.xlu1 %v1690_v63, %s3088_s3  ;;  %v1692_v1 = vmax.f32 %v1660_v25, 0.0 }
 0x628   :  { %v1661_v4 = vadd.f32 %v3829_v18, %v1620_v53  ;;  %v1662_v32 = vadd.f32 %v3829_v18, %v1621_v56  ;;  %1785 = vrot.lane.b32.xlu0 %v1691_v29, %s3088_s3 }
 0x629   :  { %v1552_v45 = vpop.permute.xlu0 %1551  ;;  %v1554_v46 = vpop.permute.xlu1 %1553 }
 0x62a   :  { %v1693_v48 = vmax.f32 %v1661_v4, 0.0  ;;  %v1622_v34 = vadd.f32 %v3363_v5, %v1552_v45  ;;  %v1623_v35 = vadd.f32 %v1554_v46, %v3369_v8  ;;  %1787 = vrot.lane.b32.xlu1 %v1692_v1, %s3088_s3  ;;  %v1694_v3 = vmax.f32 %v1662_v32, 0.0 }
 0x62c   :  { %v1663_v6 = vadd.f32 %v3829_v18, %v1622_v34  ;;  %v1664_v55 = vadd.f32 %v3829_v18, %v1623_v35  ;;  %1789 = vrot.lane.b32.xlu0 %v1693_v48, %s3088_s3 }
 0x62d   :  { %v1556_v58 = vpop.permute.xlu0 %1555  ;;  %v1558_v36 = vpop.permute.xlu1 %1557 }
 0x62e   :  { %v1695_v37 = vmax.f32 %v1663_v6, 0.0  ;;  %v1624_v38 = vadd.f32 %v3367_v7, %v1556_v58  ;;  %v1625_v39 = vadd.f32 %v1558_v36, %v3373_v10  ;;  %1791 = vrot.lane.b32.xlu1 %v1694_v3, %s3088_s3  ;;  %v1696_v5 = vmax.f32 %v1664_v55, 0.0 }
 0x630   :  { %v1665_v8 = vadd.f32 %v3829_v18, %v1624_v38  ;;  %v1666_v47 = vadd.f32 %v3829_v18, %v1625_v39  ;;  %1793 = vrot.lane.b32.xlu0 %v1695_v37, %s3088_s3 }
 0x631   :  { %v1560_v50 = vpop.permute.xlu0 %1559  ;;  %v1562_v57 = vpop.permute.xlu1 %1561 }
 0x632   :  { %v1697_v60 = vmax.f32 %v1665_v8, 0.0  ;;  %v1626_v40 = vadd.f32 %v3371_v9, %v1560_v50  ;;  %v1627_v41 = vadd.f32 %v1562_v57, %v3388_v16  ;;  %1795 = vrot.lane.b32.xlu1 %v1696_v5, %s3088_s3  ;;  %v1698_v7 = vmax.f32 %v1666_v47, 0.0 }
 0x634   :  { %v1667_v10 = vadd.f32 %v3829_v18, %v1626_v40  ;;  %v1668_v42 = vadd.f32 %v3829_v18, %v1627_v41  ;;  %1797 = vrot.lane.b32.xlu0 %v1697_v60, %s3088_s3 }
 0x635   :  { %v1564_v43 = vpop.permute.xlu0 %1563 }
 0x636   :  { %v1699_v44 = vmax.f32 %v1667_v10, 0.0  ;;  %v1628_v12 = vadd.f32 %v3382_v13, %v1564_v43  ;;  %1799 = vrot.lane.b32.xlu1 %v1698_v7, %s3088_s3  ;;  %v1700_v59 = vmax.f32 %v1668_v42, 0.0 }
 0x638   :  { %v1669_v9 = vadd.f32 %v3829_v18, %v1628_v12  ;;  %1801 = vrot.lane.b32.xlu0 %v1699_v44, %s3088_s3 }
 0x63a   :  { %v1701_v16 = vmax.f32 %v1669_v9, 0.0  ;;  %1803 = vrot.lane.b32.xlu1 %v1700_v59, %s3088_s3 }
 0x63c   :  { %1805 = vrot.lane.b32.xlu0 %v1701_v16, %s3088_s3 }
 0x63e   :  { %2258 = vrot.lane.b32.xlu1 %v3477_v33, %s3089_s16 }
 0x640   :  { %2260 = vrot.lane.b32.xlu0 %v3474_v30, %s3089_s16 }
 0x642   :  { %2266 = vrot.lane.b32.xlu1 %v3484_v31, %s3089_s16 }
 0x644   :  { %2268 = vrot.lane.b32.xlu0 %v3482_v28, %s3089_s16 }
 0x670   :  { %v1746_v13 = vpop.permute.xlu0 %1745  ;;  %v1744_v62 = vpop.permute.xlu1 %1743 }
 0x671   :  { %2987 = vmatprep.mubr.msk.f32.mxu1 %vm558_vm1, %v1744_v62 }
 0x672   :  { %2988 = vmatmul.mubr.msk.f32.vlgmr.msra.gmra.mxu1 %vm558_vm1, %v1746_v13 }
 0x674   :  { %v1748_v18 = vpop.permute.xlu1 %1747 }
 0x675   :  { %2990 = vmatprep.mubr.msk.f32.mxu1 %vm558_vm1, %v1748_v18 }
 0x676   :  { %v1750_v49 = vpop.permute.xlu0 %1749 }
 0x677   :  { %2991 = vmatmul.mubr.msk.f32.gmra.mxu1 %vm558_vm1, %v1750_v49 }
 0x678   :  { %v1752_v52 = vpop.permute.xlu1 %1751 }
 0x679   :  { %2993 = vmatprep.mubr.msk.f32.mxu1 %vm558_vm1, %v1752_v52 }
 0x67a   :  { %v1754_v30 = vpop.permute.xlu0 %1753 }
 0x67b   :  { %2994 = vmatmul.mubr.msk.f32.gmra.mxu1 %vm558_vm1, %v1754_v30 }
 0x67c   :  { %v1756_v33 = vpop.permute.xlu1 %1755 }
 0x67d   :  { %2996 = vmatprep.mubr.msk.f32.mxu1 %vm558_vm1, %v1756_v33 }
 0x67e   :  { %v1758_v28 = vpop.permute.xlu0 %1757 }
 0x67f   :  { %2997 = vmatmul.mubr.msk.f32.gmra.mxu1 %vm558_vm1, %v1758_v28 }
 0x680   :  { %v1760_v31 = vpop.permute.xlu1 %1759 }
 0x681   :  { %2999 = vmatprep.mubr.msk.f32.mxu1 %vm558_vm1, %v1760_v31 }
 0x682   :  { %v1762_v14 = vpop.permute.xlu0 %1761 }
 0x683   :  { %3000 = vmatmul.mubr.msk.f32.gmra.mxu1 %vm558_vm1, %v1762_v14 }
 0x684   :  { %v1764_v17 = vpop.permute.xlu1 %1763 }
 0x685   :  { %3002 = vmatprep.mubr.msk.f32.mxu1 %vm558_vm1, %v1764_v17 }
 0x686   :  { %v1766_v11 = vpop.permute.xlu0 %1765 }
 0x687   :  { %3003 = vmatmul.mubr.msk.f32.gmra.mxu1 %vm558_vm1, %v1766_v11 }
 0x688   :  { %v1768_v19 = vpop.permute.xlu1 %1767 }
 0x689   :  { %3005 = vmatprep.mubr.msk.f32.mxu1 %vm558_vm1, %v1768_v19 }
 0x68a   :  { %v1770_v61 = vpop.permute.xlu0 %1769 }
 0x68b   :  { %3006 = vmatmul.mubr.msk.f32.gmra.mxu1 %vm558_vm1, %v1770_v61 }
 0x68c   :  { %v1772_v0 = vpop.permute.xlu1 %1771 }
 0x68d   :  { %3008 = vmatprep.mubr.msk.f32.mxu1 %vm558_vm1, %v1772_v0 }
 0x68e   :  { %v1774_v21 = vpop.permute.xlu0 %1773 }
 0x68f   :  { %3009 = vmatmul.mubr.msk.f32.gmra.mxu1 %vm558_vm1, %v1774_v21 }
 0x690   :  { %v1776_v22 = vpop.permute.xlu1 %1775 }
 0x691   :  { %3011 = vmatprep.mubr.msk.f32.mxu1 %vm558_vm1, %v1776_v22 }
 0x692   :  { %v1778_v51 = vpop.permute.xlu0 %1777 }
 0x693   :  { %3012 = vmatmul.mubr.msk.f32.gmra.mxu1 %vm558_vm1, %v1778_v51 }
 0x694   :  { %v1780_v54 = vpop.permute.xlu1 %1779 }
 0x695   :  { %3014 = vmatprep.mubr.msk.f32.mxu1 %vm558_vm1, %v1780_v54 }
 0x696   :  { %v1782_v23 = vpop.permute.xlu0 %1781 }
 0x697   :  { %3015 = vmatmul.mubr.msk.f32.gmra.mxu1 %vm558_vm1, %v1782_v23 }
 0x698   :  { %v1784_v24 = vpop.permute.xlu1 %1783 }
 0x699   :  { %3017 = vmatprep.mubr.msk.f32.mxu1 %vm558_vm1, %v1784_v24 }
 0x69a   :  { %v1786_v63 = vpop.permute.xlu0 %1785 }
 0x69b   :  { %3018 = vmatmul.mubr.msk.f32.gmra.mxu1 %vm558_vm1, %v1786_v63 }
 0x69c   :  { %v1788_v2 = vpop.permute.xlu1 %1787 }
 0x69d   :  { %3020 = vmatprep.mubr.msk.f32.mxu1 %vm558_vm1, %v1788_v2 }
 0x69e   :  { %v1790_v25 = vpop.permute.xlu0 %1789 }
 0x69f   :  { %3021 = vmatmul.mubr.msk.f32.gmra.mxu1 %vm558_vm1, %v1790_v25 }
 0x6a0   :  { %v1792_v26 = vpop.permute.xlu1 %1791 }
 0x6a1   :  { %3023 = vmatprep.mubr.msk.f32.mxu1 %vm558_vm1, %v1792_v26 }
 0x6a2   :  { %v1794_v27 = vpop.permute.xlu0 %1793 }
 0x6a3   :  { %3024 = vmatmul.mubr.msk.f32.gmra.mxu1 %vm558_vm1, %v1794_v27 }
 0x6a4   :  { %v1796_v29 = vpop.permute.xlu1 %1795 }
 0x6a5   :  { %3026 = vmatprep.mubr.msk.f32.mxu1 %vm558_vm1, %v1796_v29 }
 0x6a6   :  { %v1798_v53 = vpop.permute.xlu0 %1797 }
 0x6a7   :  { %3027 = vmatmul.mubr.msk.f32.gmra.mxu1 %vm558_vm1, %v1798_v53 }
 0x6a8   :  { %v1800_v56 = vpop.permute.xlu1 %1799 }
 0x6a9   :  { %3029 = vmatprep.mubr.msk.f32.mxu1 %vm558_vm1, %v1800_v56 }
 0x6aa   :  { %v1802_v1 = vpop.permute.xlu0 %1801 }
 0x6ab   :  { %3030 = vmatmul.mubr.msk.f32.gmra.mxu1 %vm558_vm1, %v1802_v1 }
 0x6ac   :  { %v1804_v4 = vpop.permute.xlu1 %1803 }
 0x6ad   :  { %3032 = vmatprep.mubr.msk.f32.mxu1 %vm558_vm1, %v1804_v4 }
 0x6ae   :  { %v1806_v32 = vpop.permute.xlu0 %1805 }
 0x6af   :  { %3033 = vmatmul.mubr.msk.f32.gmra.mxu1 %vm558_vm1, %v1806_v32 }
 0x6b0   :  { %v2259_v45 = vpop.permute.xlu1 %2258 }
 0x6b1   :  { %v2272_v48 = vsel %vm700_vm8, %v3514_v20, %v2259_v45  ;;  %v3974_v20 = vld [vmem:[%s4016_s5 + $0x3] ss:$0 sm:$0xff]  ;;  %s3090_s5 = smov [#allocation2]  }
 0x6b2   :  { %v2261_v46 = vpop.permute.xlu0 %2260 }
 0x6b3   :  { %v2273_v3 = vsel %vm700_vm8, %v3505_v15, %v2261_v46 }
 0x6b4   :  { %v2267_v34 = vpop.permute.xlu1 %2266 }
 0x6b5   :  { %v2275_v35 = vsel %vm2274_vm14, %v2272_v48, %v2267_v34 }
 0x6b6   :  { %v2278_v6 = vsel %vm2277_vm15, %v2275_v35, 0.0  ;;  %v2269_v55 = vpop.permute.xlu0 %2268 }
 0x6b7   :  { %2280 = vst [vmem:[%s4021_s10] sm:$0xff] %v2278_v6  ;;  %v2276_v58 = vsel %vm2274_vm14, %v2273_v3, %v2269_v55 }
 0x6b8   :  { %v2279_v36 = vsel %vm2277_vm15, %v2276_v58, 0.0 }
 0x6b9   :  { %2281 = vst [vmem:[%s4021_s10 + $0x8] sm:$0xff] %v2279_v36  ;;  %s2287_s10 = sshll.u32 %s3090_s5, 4  ;;  %s2288_s10 = int_to_ptr.vmem [resolvable:$true] %s2287_s10 }
 0x6ba   :  { %s3062_s21 = scalar_lea.vmem %s2288_s10, 2048  ;;  %p3067_p1 = scmp.lt.s32.totalorder %s2288_s10, %s2288_s10 }
 0x6bb   :  { %p3063_p0 = scmp.ne.s32.totalorder %s2288_s10, %s3062_s21  ;;  %p3068_p2 = scmp.lt.s32.totalorder %s3062_s21, %s3062_s21 }
 0x6bd   :  { %p3069_p3 = por %p3068_p2, %p3067_p1 }
 0x6bf   :  { %p3070_p4 = pnand %p3069_p3, %p3063_p0 }
 0x732   :  { %v2989_v37 = vpop.f32.mrf.mxu1 }
 0x733   :  { %v1943_v15 = vadd.f32 %v2989_v37, %v3974_v20 }
 0x734   :  { %v1937_v38 = vpop.f32.mrf.mxu1 }
 0x735   :  { %v1938_v39 = vadd.f32 %v3974_v20, %v1937_v38 }
 0x737   :  { %v2505_v5 = vpack.c.bf16 %v1943_v15, %v1938_v39  ;;  %v2992_v8 = vpop.f32.mrf.mxu1 }
 0x738   :  { %v1953_v50 = vadd.f32 %v2992_v8, %v3974_v20 }
 0x739   :  { %2506 = vst [vmem:[#allocation2] sm:$0xff] %v2505_v5   ;;  %v1947_v47 = vpop.f32.mrf.mxu1 }
 0x73a   :  { %v1948_v57 = vadd.f32 %v3974_v20, %v1947_v47 }
 0x73b   :  { %v2995_v60 = vpop.f32.mrf.mxu1 }
 0x73c   :  { %v2510_v40 = vpack.c.bf16 %v1953_v50, %v1948_v57  ;;  %v1963_v7 = vadd.f32 %v2995_v60, %v3974_v20 }
 0x73d   :  { %v1957_v41 = vpop.f32.mrf.mxu1 }
 0x73e   :  { %2582 = vst [vmem:[#allocation2 + $0x8] sm:$0xff] %v2510_v40   ;;  %v1958_v10 = vadd.f32 %v3974_v20, %v1957_v41 }
 0x73f   :  { %v2998_v42 = vpop.f32.mrf.mxu1 }
 0x740   :  { %v2515_v43 = vpack.c.bf16 %v1963_v7, %v1958_v10  ;;  %v1973_v12 = vadd.f32 %v2998_v42, %v3974_v20 }
 0x741   :  { %v1967_v44 = vpop.f32.mrf.mxu1 }
 0x742   :  { %2583 = vst [vmem:[#allocation2 + $0x10] sm:$0xff] %v2515_v43   ;;  %v1968_v59 = vadd.f32 %v3974_v20, %v1967_v44 }
 0x743   :  { %v3001_v9 = vpop.f32.mrf.mxu1 }
 0x744   :  { %v2520_v16 = vpack.c.bf16 %v1973_v12, %v1968_v59  ;;  %v1983_v62 = vadd.f32 %v3001_v9, %v3974_v20 }
 0x745   :  { %v1977_v13 = vpop.f32.mrf.mxu1 }
 0x746   :  { %2584 = vst [vmem:[#allocation2 + $0x18] sm:$0xff] %v2520_v16   ;;  %v1978_v18 = vadd.f32 %v3974_v20, %v1977_v13 }
 0x747   :  { %v3004_v49 = vpop.f32.mrf.mxu1 }
 0x748   :  { %v2525_v52 = vpack.c.bf16 %v1983_v62, %v1978_v18  ;;  %v1993_v33 = vadd.f32 %v3004_v49, %v3974_v20 }
 0x749   :  { %v1987_v30 = vpop.f32.mrf.mxu1 }
 0x74a   :  { %2585 = vst [vmem:[#allocation2 + $0x20] sm:$0xff] %v2525_v52   ;;  %v1988_v28 = vadd.f32 %v3974_v20, %v1987_v30 }
 0x74b   :  { %v3007_v31 = vpop.f32.mrf.mxu1 }
 0x74c   :  { %v2530_v14 = vpack.c.bf16 %v1993_v33, %v1988_v28  ;;  %v2003_v11 = vadd.f32 %v3007_v31, %v3974_v20 }
 0x74d   :  { %v1997_v17 = vpop.f32.mrf.mxu1 }
 0x74e   :  { %2586 = vst [vmem:[#allocation2 + $0x28] sm:$0xff] %v2530_v14   ;;  %v1998_v19 = vadd.f32 %v3974_v20, %v1997_v17 }
 0x74f   :  { %v3010_v61 = vpop.f32.mrf.mxu1 }
 0x750   :  { %v2535_v0 = vpack.c.bf16 %v2003_v11, %v1998_v19  ;;  %v2013_v22 = vadd.f32 %v3010_v61, %v3974_v20 }
 0x751   :  { %v2007_v21 = vpop.f32.mrf.mxu1 }
 0x752   :  { %2587 = vst [vmem:[#allocation2 + $0x30] sm:$0xff] %v2535_v0   ;;  %v2008_v51 = vadd.f32 %v3974_v20, %v2007_v21 }
 0x753   :  { %v3013_v54 = vpop.f32.mrf.mxu1 }
 0x754   :  { %v2540_v23 = vpack.c.bf16 %v2013_v22, %v2008_v51  ;;  %v2023_v63 = vadd.f32 %v3013_v54, %v3974_v20 }
 0x755   :  { %v2017_v24 = vpop.f32.mrf.mxu1 }
 0x756   :  { %2588 = vst [vmem:[#allocation2 + $0x38] sm:$0xff] %v2540_v23   ;;  %v2018_v2 = vadd.f32 %v3974_v20, %v2017_v24 }
 0x757   :  { %v3016_v25 = vpop.f32.mrf.mxu1 }
 0x758   :  { %v2545_v26 = vpack.c.bf16 %v2023_v63, %v2018_v2  ;;  %v2033_v29 = vadd.f32 %v3016_v25, %v3974_v20 }
 0x759   :  { %v2027_v27 = vpop.f32.mrf.mxu1 }
 0x75a   :  { %2589 = vst [vmem:[#allocation2 + $0x40] sm:$0xff] %v2545_v26   ;;  %v2028_v53 = vadd.f32 %v3974_v20, %v2027_v27 }
 0x75b   :  { %v3019_v56 = vpop.f32.mrf.mxu1 }
 0x75c   :  { %v2550_v1 = vpack.c.bf16 %v2033_v29, %v2028_v53  ;;  %v2043_v32 = vadd.f32 %v3019_v56, %v3974_v20 }
 0x75d   :  { %v2037_v4 = vpop.f32.mrf.mxu1 }
 0x75e   :  { %2590 = vst [vmem:[#allocation2 + $0x48] sm:$0xff] %v2550_v1   ;;  %v2038_v45 = vadd.f32 %v3974_v20, %v2037_v4 }
 0x75f   :  { %v3022_v46 = vpop.f32.mrf.mxu1 }
 0x760   :  { %v2555_v48 = vpack.c.bf16 %v2043_v32, %v2038_v45  ;;  %v2053_v35 = vadd.f32 %v3022_v46, %v3974_v20 }
 0x761   :  { %v2047_v34 = vpop.f32.mrf.mxu1 }
 0x762   :  { %2591 = vst [vmem:[#allocation2 + $0x50] sm:$0xff] %v2555_v48   ;;  %v2048_v3 = vadd.f32 %v3974_v20, %v2047_v34 }
 0x763   :  { %v3025_v6 = vpop.f32.mrf.mxu1 }
 0x764   :  { %v2560_v55 = vpack.c.bf16 %v2053_v35, %v2048_v3  ;;  %v2063_v36 = vadd.f32 %v3025_v6, %v3974_v20 }
 0x765   :  { %v2057_v58 = vpop.f32.mrf.mxu1 }
 0x766   :  { %2592 = vst [vmem:[#allocation2 + $0x58] sm:$0xff] %v2560_v55   ;;  %v2058_v37 = vadd.f32 %v3974_v20, %v2057_v58 }
 0x767   :  { %v3028_v38 = vpop.f32.mrf.mxu1 }
 0x768   :  { %v2565_v15 = vpack.c.bf16 %v2063_v36, %v2058_v37  ;;  %v2073_v5 = vadd.f32 %v3028_v38, %v3974_v20 }
 0x769   :  { %v2067_v39 = vpop.f32.mrf.mxu1 }
 0x76a   :  { %2593 = vst [vmem:[#allocation2 + $0x60] sm:$0xff] %v2565_v15   ;;  %v2068_v8 = vadd.f32 %v3974_v20, %v2067_v39 }
 0x76b   :  { %v3031_v47 = vpop.f32.mrf.mxu1 }
 0x76c   :  { %v2570_v50 = vpack.c.bf16 %v2073_v5, %v2068_v8  ;;  %v2083_v60 = vadd.f32 %v3031_v47, %v3974_v20 }
 0x76d   :  { %v2077_v57 = vpop.f32.mrf.mxu1 }
 0x76e   :  { %2594 = vst [vmem:[#allocation2 + $0x68] sm:$0xff] %v2570_v50   ;;  %v2078_v40 = vadd.f32 %v3974_v20, %v2077_v57 }
 0x76f   :  { %v3034_v41 = vpop.f32.mrf.mxu1 }
 0x770   :  { %v2575_v7 = vpack.c.bf16 %v2083_v60, %v2078_v40  ;;  %v2093_v42 = vadd.f32 %v3034_v41, %v3974_v20 }
 0x771   :  { %v2087_v10 = vpop.f32.mrf.mxu1 }
 0x772   :  { %2595 = vst [vmem:[#allocation2 + $0x70] sm:$0xff] %v2575_v7   ;;  %v2088_v43 = vadd.f32 %v3974_v20, %v2087_v10 }
 0x774   :  { %v2580_v44 = vpack.c.bf16 %v2093_v42, %v2088_v43 }
 0x776   :  { %2596 = vst [vmem:[#allocation2 + $0x78] sm:$0xff] %v2580_v44  }
 0x777   :  { %3073 = shalt.err (!%p3070_p4)
}
 0x778   :  { %s3091_s1 = smov 64   ;;  %s3092_s22 = smov 4  }
 0x779   :  { %2293 = dma.vmem_to_hbm [thread:$0]  %s2288_s10, 2048, %s4020_s9, [#allocation3], %s3091_s1, %s3091_s1, %s3092_s22  }
 0x77a   :  { %3082 = dma.done.wait [#allocation3], 2048  }
 0x77b   :  { %3083 = vsyncadd [#allocation3], 4294965248 }
 0x77c   :  { %2301 = vsyncpa [#allocation3], 1 }

</bundles_post_ra>
